<compile_context>
chip_gen: v7x
topology: tpu7x:2x2x1
jax: 0.10.0
libtpu: 0.0.40
codegen_flags: <defaults>
</compile_context>

<pallas_src>
import jax
import jax.numpy as jnp
from jax.experimental import pallas as pl
from jax.experimental.pallas import tpu as pltpu


# ----------------------------------------------------------------------------
# Block sizing helper: pick a sublane-aligned M block that tiles a padded M.
# ----------------------------------------------------------------------------
def _round_up(x, m):
    return (x + m - 1) // m * m


def _pick_blocks(m, block_m):
    """Return (mb, m_padded, num_blocks) with mb % 8 == 0 and mb * num_blocks == m_padded."""
    num_blocks = max(1, -(-m // block_m))
    mb = _round_up(-(-m // num_blocks), 8)
    return mb, mb * num_blocks, num_blocks


# ----------------------------------------------------------------------------
# Pallas kernels
# ----------------------------------------------------------------------------
def conv_relu_pool_kernel(p_ref, wt_ref, b_ref, o_ref):
    """Fused conv (im2col matmul) + 2x2 max-pool + bias + ReLU for one M block.

    p_ref  : (4, Mb, K)  patches for the 4 positions of each 2x2 pool window
    wt_ref : (K, C)      conv weight, pre-permuted to the patch feature order
    b_ref  : (1, C)      conv bias
    o_ref  : (Mb, C)     pooled/activated output rows (pooled pixels, NHWC order)
    """
    P, Mb, K = p_ref.shape
    # One MXU matmul for all 4 pool positions (leading-dim collapse is layout-free).
    y = jnp.dot(p_ref[...].reshape(P * Mb, K), wt_ref[...],
                preferred_element_type=jnp.float32)
    y = y.reshape(P, Mb, y.shape[-1])
    pooled = jnp.maximum(jnp.maximum(y[0], y[1]), jnp.maximum(y[2], y[3]))
    # relu(max_i(x_i) + b) == maxpool(relu(x_i + b)) since bias is shared, ReLU monotone.
    o_ref[...] = jnp.maximum(pooled + b_ref[...], 0.0)


def linear_kernel(x_ref, wt_ref, b_ref, o_ref):
    """out = x @ wt + b  (wt already transposed/permuted)."""
    o_ref[...] = (
        jnp.dot(x_ref[...], wt_ref[...], preferred_element_type=jnp.float32)
        + b_ref[...]
    )


# ----------------------------------------------------------------------------
# Pallas wrappers
# ----------------------------------------------------------------------------
def conv_relu_pool(patches, wt, b, block_m=512):
    """patches: (4, M, K); wt: (K, C); b: (1, C)  ->  (M, C)  (rows: (n, hp, wp))."""
    P, M, K = patches.shape
    C = wt.shape[1]
    mb, m_pad, nb = _pick_blocks(M, block_m)
    if m_pad != M:
        patches = jnp.pad(patches, ((0, 0), (0, m_pad - M), (0, 0)))
    out = pl.pallas_call(
        conv_relu_pool_kernel,
        out_shape=jax.ShapeDtypeStruct((m_pad, C), jnp.float32),
        grid=(nb,),
        in_specs=[
            pl.BlockSpec((P, mb, K), lambda i: (0, i, 0)),
            pl.BlockSpec((K, C), lambda i: (0, 0)),
            pl.BlockSpec((1, C), lambda i: (0, 0)),
        ],
        out_specs=pl.BlockSpec((mb, C), lambda i: (i, 0)),
        compiler_params=pltpu.CompilerParams(dimension_semantics=("parallel",)),
    )(patches, wt, b)
    return out[:M]


def linear(x, wt, b, block_m=256):
    """x: (N, D); wt: (D, C) pre-permuted; b: (1, C) -> (N, C)."""
    M, D = x.shape
    C = wt.shape[1]
    mb, m_pad, nb = _pick_blocks(M, block_m)
    if m_pad != M:
        x = jnp.pad(x, ((0, m_pad - M), (0, 0)))
    out = pl.pallas_call(
        linear_kernel,
        out_shape=jax.ShapeDtypeStruct((m_pad, C), jnp.float32),
        grid=(nb,),
        in_specs=[
            pl.BlockSpec((mb, D), lambda i: (i, 0)),
            pl.BlockSpec((D, C), lambda i: (0, 0)),
            pl.BlockSpec((1, C), lambda i: (0, 0)),
        ],
        out_specs=pl.BlockSpec((mb, C), lambda i: (i, 0)),
        compiler_params=pltpu.CompilerParams(dimension_semantics=("parallel",)),
    )(x, wt, b)
    return out[:M]


# ----------------------------------------------------------------------------
# Plain-JAX glue: im2col grouped by 2x2 pool position, NHWC, batch folded into M.
# 25 slices + one reshape/transpose per layer.
# ----------------------------------------------------------------------------
def im2col_pool_nhwc(x_nhwc, ksize=5, pad=2, pool=2):
    """x: (N, H, W, C) -> (pool*pool, N*Hp*Wp, ksize*ksize*C).

    Feature order is (kh, kw, c); leading axis is the (dy, dx) pool-window position;
    rows are (n, hp, wp) row-major, so the kernel output is NHWC of the pooled map.
    """
    N, H, W, C = x_nhwc.shape
    Hp, Wp = H // pool, W // pool
    K = ksize * ksize * C
    xp = jnp.pad(x_nhwc, ((0, 0), (pad, pad), (pad, pad), (0, 0)))
    cols = [xp[:, kh:kh + H, kw:kw + W, :]
            for kh in range(ksize) for kw in range(ksize)]
    patches = jnp.stack(cols, axis=3)                 # (N, H, W, k*k, C)
    patches = patches.reshape(N, Hp, pool, Wp, pool, K)
    patches = patches.transpose(2, 4, 0, 1, 3, 5)     # (pool, pool, N, Hp, Wp, K)
    return patches.reshape(pool * pool, N * Hp * Wp, K)


# ----------------------------------------------------------------------------
# Full forward pass
# ----------------------------------------------------------------------------
def cnn_forward(x, params):
    w1, b1, w2, b2, w3, b3 = params
    N = x.shape[0]

    # Pre-permute weights once so no activation transposes are needed between layers.
    wt1 = w1.transpose(2, 3, 1, 0).reshape(5 * 5 * 1, 16)      # (25, 16)
    wt2 = w2.transpose(2, 3, 1, 0).reshape(5 * 5 * 16, 64)     # (400, 64)
    wt3 = w3.reshape(26, 64, 5, 3).transpose(2, 3, 1, 0).reshape(5 * 3 * 64, 26)

    # conv1 + ReLU + MaxPool2d(2):  (N,1,20,12) -> rows (n, 10, 6), 16 channels
    x_nhwc = x.transpose(0, 2, 3, 1)                            # (N, 20, 12, 1)
    p1 = im2col_pool_nhwc(x_nhwc)                               # (4, N*60, 25)
    y1 = conv_relu_pool(p1, wt1, b1.reshape(1, 16))             # (N*60, 16)

    # conv2 + ReLU + MaxPool2d(2):  NHWC (N,10,6,16) -> rows (n, 5, 3), 64 channels
    p2 = im2col_pool_nhwc(y1.reshape(N, 10, 6, 16))             # (4, N*15, 400)
    y2 = conv_relu_pool(p2, wt2, b2.reshape(1, 64))             # (N*15, 64)

    # NHWC flatten; the NCHW `.view(-1, 960)` permutation is absorbed into wt3.
    flat = y2.reshape(N, 5 * 3 * 64)

    # Linear(960 -> 26)
    return linear(flat, wt3, b3.reshape(1, 26))


# ----------------------------------------------------------------------------
# Pure-JAX reference (for correctness check only)
# ----------------------------------------------------------------------------
def ref_forward(x, params):
    w1, b1, w2, b2, w3, b3 = params

    def block(x, w, b):
        y = jax.lax.conv_general_dilated(
            x, w, window_strides=(1, 1), padding=[(2, 2), (2, 2)],
            dimension_numbers=("NCHW", "OIHW", "NCHW"),
        )
        y = jnp.maximum(y + b[None, :, None, None], 0.0)
        return jax.lax.reduce_window(
            y, -jnp.inf, jax.lax.max, (1, 1, 2, 2), (1, 1, 2, 2), "VALID"
        )

    y = block(x, w1, b1)
    y = block(y, w2, b2)
    flat = y.reshape(x.shape[0], -1)   # NCHW flatten == torch .view(-1, 960)
    return flat @ w3.T + b3


# ----------------------------------------------------------------------------
def init_params(key):
    k1, k2, k3, k4, k5, k6 = jax.random.split(key, 6)
    w1 = jax.random.normal(k1, (16, 1, 5, 5), jnp.float32) * 0.1
    b1 = jax.random.normal(k2, (16,), jnp.float32) * 0.1
    w2 = jax.random.normal(k3, (64, 16, 5, 5), jnp.float32) * 0.05
    b2 = jax.random.normal(k4, (64,), jnp.float32) * 0.05
    w3 = jax.random.normal(k5, (26, 5 * 3 * 64), jnp.float32) * 0.03
    b3 = jax.random.normal(k6, (26,), jnp.float32) * 0.03
    return (w1, b1, w2, b2, w3, b3)


if __name__ == "__main__":
    key = jax.random.PRNGKey(0)
    kx, kp = jax.random.split(key)
    params = init_params(kp)

    # batch=2, NCHW input (N, 1, 20, 12) — dictated by Linear(5*3*64, 26)
    x = jax.random.normal(kx, (2, 1, 20, 12), jnp.float32)

    fwd = jax.jit(cnn_forward)
    out = jax.block_until_ready(fwd(x, params))
    ref = jax.block_until_ready(ref_forward(x, params))

    assert out.shape == (2, 26), out.shape
    assert jnp.allclose(out, ref, rtol=1e-3, atol=1e-3), "mismatch vs reference"
    print("KERNEL_OK")
</pallas_src>

<mosaic_0001>
module attributes {stable_mosaic.version = 11 : i64} {
  func.func @conv_relu_pool_kernel(%arg0: i32, %arg1: memref<4x120x25xf32, #tpu.memory_space<vmem>>, %arg2: memref<25x16xf32, #tpu.memory_space<vmem>>, %arg3: memref<1x16xf32, #tpu.memory_space<vmem>>, %arg4: memref<120x16xf32, #tpu.memory_space<vmem>>) attributes {dimension_semantics = [#tpu.dimension_semantics<parallel>], iteration_bounds = array<i64: 1>, scalar_prefetch = 0 : i64, scratch_operands = 0 : i64, tpu.core_type = #tpu.core_type<tc>, window_params = [{transform_indices = @transform_0, window_bounds = array<i64: 4, 120, 25>}, {pipeline_mode = #tpu.pipeline_mode<synchronous>, transform_indices = @transform_1, window_bounds = array<i64: 25, 16>}, {pipeline_mode = #tpu.pipeline_mode<synchronous>, transform_indices = @transform_2, window_bounds = array<i64: 1, 16>}, {transform_indices = @transform_3, window_bounds = array<i64: 120, 16>}]} {
    %c0 = arith.constant 0 : index
    %c0_0 = arith.constant 0 : index
    %c0_1 = arith.constant 0 : index
    %0 = vector.load %arg1[%c0, %c0_0, %c0_1] : memref<4x120x25xf32, #tpu.memory_space<vmem>>, vector<4x120x25xf32>
    %1 = vector.shape_cast %0 : vector<4x120x25xf32> to vector<480x25xf32>
    %c0_2 = arith.constant 0 : index
    %c0_3 = arith.constant 0 : index
    %2 = vector.load %arg2[%c0_2, %c0_3] : memref<25x16xf32, #tpu.memory_space<vmem>>, vector<25x16xf32>
    %cst = arith.constant dense<0.000000e+00> : vector<480x16xf32>
    %3 = tpu.matmul %1, %2, %cst {dimension_numbers = #tpu.dot_dimension_numbers<[1], [0], [0], [1], [0, 0, 1, 1], [], []>} : vector<480x25xf32>, vector<25x16xf32>, vector<480x16xf32> -> vector<480x16xf32>
    %4 = vector.shape_cast %3 : vector<480x16xf32> to vector<4x120x16xf32>
    %5 = vector.extract_strided_slice %4 {offsets = [0, 0, 0], sizes = [1, 120, 16], strides = [1, 1, 1]} : vector<4x120x16xf32> to vector<1x120x16xf32>
    %6 = vector.shape_cast %5 : vector<1x120x16xf32> to vector<120x16xf32>
    %7 = vector.extract_strided_slice %4 {offsets = [1, 0, 0], sizes = [1, 120, 16], strides = [1, 1, 1]} : vector<4x120x16xf32> to vector<1x120x16xf32>
    %8 = vector.shape_cast %7 : vector<1x120x16xf32> to vector<120x16xf32>
    %9 = arith.maximumf %6, %8 : vector<120x16xf32>
    %10 = vector.extract_strided_slice %4 {offsets = [2, 0, 0], sizes = [1, 120, 16], strides = [1, 1, 1]} : vector<4x120x16xf32> to vector<1x120x16xf32>
    %11 = vector.shape_cast %10 : vector<1x120x16xf32> to vector<120x16xf32>
    %12 = vector.extract_strided_slice %4 {offsets = [3, 0, 0], sizes = [1, 120, 16], strides = [1, 1, 1]} : vector<4x120x16xf32> to vector<1x120x16xf32>
    %13 = vector.shape_cast %12 : vector<1x120x16xf32> to vector<120x16xf32>
    %14 = arith.maximumf %11, %13 : vector<120x16xf32>
    %15 = arith.maximumf %9, %14 : vector<120x16xf32>
    %c0_4 = arith.constant 0 : index
    %c0_5 = arith.constant 0 : index
    %16 = vector.load %arg3[%c0_4, %c0_5] : memref<1x16xf32, #tpu.memory_space<vmem>>, vector<1x16xf32>
    %17 = vector.broadcast %16 : vector<1x16xf32> to vector<120x16xf32>
    %18 = arith.addf %15, %17 : vector<120x16xf32>
    %cst_6 = arith.constant 0.000000e+00 : f32
    %19 = vector.broadcast %cst_6 : f32 to vector<120x16xf32>
    %20 = arith.maximumf %18, %19 : vector<120x16xf32>
    %c0_7 = arith.constant 0 : index
    %c0_8 = arith.constant 0 : index
    %21 = vector.load %arg4[%c0_7, %c0_8] : memref<120x16xf32, #tpu.memory_space<vmem>>, vector<120x16xf32>
    tpu.vector_store %arg4[%c0_7, %c0_8], %20 {strides = array<i32>} : memref<120x16xf32, #tpu.memory_space<vmem>>, vector<120x16xf32>,
    return
  }
  func.func @transform_0(%arg0: i32) -> (i32, i32, i32) {
    %c0_i32 = arith.constant 0 : i32
    %c0_i32_0 = arith.constant 0 : i32
    %c0_i32_1 = arith.constant 0 : i32
    return %c0_i32, %arg0, %c0_i32_0 : i32, i32, i32
  }
  func.func @transform_1(%arg0: i32) -> (i32, i32) {
    %c0_i32 = arith.constant 0 : i32
    %c0_i32_0 = arith.constant 0 : i32
    %c0_i32_1 = arith.constant 0 : i32
    return %c0_i32, %c0_i32_0 : i32, i32
  }
  func.func @transform_2(%arg0: i32) -> (i32, i32) {
    %c0_i32 = arith.constant 0 : i32
    %c0_i32_0 = arith.constant 0 : i32
    %c0_i32_1 = arith.constant 0 : i32
    return %c0_i32, %c0_i32_0 : i32, i32
  }
  func.func @transform_3(%arg0: i32) -> (i32, i32) {
    %c0_i32 = arith.constant 0 : i32
    %c0_i32_0 = arith.constant 0 : i32
    return %arg0, %c0_i32 : i32, i32
  }
}

module attributes {stable_mosaic.version = 11 : i64} {
  func.func @conv_relu_pool_kernel(%arg0: i32, %arg1: memref<4x32x400xf32, #tpu.memory_space<vmem>>, %arg2: memref<400x64xf32, #tpu.memory_space<vmem>>, %arg3: memref<1x64xf32, #tpu.memory_space<vmem>>, %arg4: memref<32x64xf32, #tpu.memory_space<vmem>>) attributes {dimension_semantics = [#tpu.dimension_semantics<parallel>], iteration_bounds = array<i64: 1>, scalar_prefetch = 0 : i64, scratch_operands = 0 : i64, tpu.core_type = #tpu.core_type<tc>, window_params = [{transform_indices = @transform_0, window_bounds = array<i64: 4, 32, 400>}, {pipeline_mode = #tpu.pipeline_mode<synchronous>, transform_indices = @transform_1, window_bounds = array<i64: 400, 64>}, {pipeline_mode = #tpu.pipeline_mode<synchronous>, transform_indices = @transform_2, window_bounds = array<i64: 1, 64>}, {transform_indices = @transform_3, window_bounds = array<i64: 32, 64>}]} {
    %c0 = arith.constant 0 : index
    %c0_0 = arith.constant 0 : index
    %c0_1 = arith.constant 0 : index
    %0 = vector.load %arg1[%c0, %c0_0, %c0_1] : memref<4x32x400xf32, #tpu.memory_space<vmem>>, vector<4x32x400xf32>
    %1 = vector.shape_cast %0 : vector<4x32x400xf32> to vector<128x400xf32>
    %c0_2 = arith.constant 0 : index
    %c0_3 = arith.constant 0 : index
    %2 = vector.load %arg2[%c0_2, %c0_3] : memref<400x64xf32, #tpu.memory_space<vmem>>, vector<400x64xf32>
    %cst = arith.constant dense<0.000000e+00> : vector<128x64xf32>
    %3 = tpu.matmul %1, %2, %cst {dimension_numbers = #tpu.dot_dimension_numbers<[1], [0], [0], [1], [0, 0, 1, 1], [], []>} : vector<128x400xf32>, vector<400x64xf32>, vector<128x64xf32> -> vector<128x64xf32>
    %4 = vector.shape_cast %3 : vector<128x64xf32> to vector<4x32x64xf32>
    %5 = vector.extract_strided_slice %4 {offsets = [0, 0, 0], sizes = [1, 32, 64], strides = [1, 1, 1]} : vector<4x32x64xf32> to vector<1x32x64xf32>
    %6 = vector.shape_cast %5 : vector<1x32x64xf32> to vector<32x64xf32>
    %7 = vector.extract_strided_slice %4 {offsets = [1, 0, 0], sizes = [1, 32, 64], strides = [1, 1, 1]} : vector<4x32x64xf32> to vector<1x32x64xf32>
    %8 = vector.shape_cast %7 : vector<1x32x64xf32> to vector<32x64xf32>
    %9 = arith.maximumf %6, %8 : vector<32x64xf32>
    %10 = vector.extract_strided_slice %4 {offsets = [2, 0, 0], sizes = [1, 32, 64], strides = [1, 1, 1]} : vector<4x32x64xf32> to vector<1x32x64xf32>
    %11 = vector.shape_cast %10 : vector<1x32x64xf32> to vector<32x64xf32>
    %12 = vector.extract_strided_slice %4 {offsets = [3, 0, 0], sizes = [1, 32, 64], strides = [1, 1, 1]} : vector<4x32x64xf32> to vector<1x32x64xf32>
    %13 = vector.shape_cast %12 : vector<1x32x64xf32> to vector<32x64xf32>
    %14 = arith.maximumf %11, %13 : vector<32x64xf32>
    %15 = arith.maximumf %9, %14 : vector<32x64xf32>
    %c0_4 = arith.constant 0 : index
    %c0_5 = arith.constant 0 : index
    %16 = vector.load %arg3[%c0_4, %c0_5] : memref<1x64xf32, #tpu.memory_space<vmem>>, vector<1x64xf32>
    %17 = vector.broadcast %16 : vector<1x64xf32> to vector<32x64xf32>
    %18 = arith.addf %15, %17 : vector<32x64xf32>
    %cst_6 = arith.constant 0.000000e+00 : f32
    %19 = vector.broadcast %cst_6 : f32 to vector<32x64xf32>
    %20 = arith.maximumf %18, %19 : vector<32x64xf32>
    %c0_7 = arith.constant 0 : index
    %c0_8 = arith.constant 0 : index
    %21 = vector.load %arg4[%c0_7, %c0_8] : memref<32x64xf32, #tpu.memory_space<vmem>>, vector<32x64xf32>
    tpu.vector_store %arg4[%c0_7, %c0_8], %20 {strides = array<i32>} : memref<32x64xf32, #tpu.memory_space<vmem>>, vector<32x64xf32>,
    return
  }
  func.func @transform_0(%arg0: i32) -> (i32, i32, i32) {
    %c0_i32 = arith.constant 0 : i32
    %c0_i32_0 = arith.constant 0 : i32
    %c0_i32_1 = arith.constant 0 : i32
    return %c0_i32, %arg0, %c0_i32_0 : i32, i32, i32
  }
  func.func @transform_1(%arg0: i32) -> (i32, i32) {
    %c0_i32 = arith.constant 0 : i32
    %c0_i32_0 = arith.constant 0 : i32
    %c0_i32_1 = arith.constant 0 : i32
    return %c0_i32, %c0_i32_0 : i32, i32
  }
  func.func @transform_2(%arg0: i32) -> (i32, i32) {
    %c0_i32 = arith.constant 0 : i32
    %c0_i32_0 = arith.constant 0 : i32
    %c0_i32_1 = arith.constant 0 : i32
    return %c0_i32, %c0_i32_0 : i32, i32
  }
  func.func @transform_3(%arg0: i32) -> (i32, i32) {
    %c0_i32 = arith.constant 0 : i32
    %c0_i32_0 = arith.constant 0 : i32
    return %arg0, %c0_i32 : i32, i32
  }
}

module attributes {stable_mosaic.version = 11 : i64} {
  func.func @linear_kernel(%arg0: i32, %arg1: memref<8x960xf32, #tpu.memory_space<vmem>>, %arg2: memref<960x26xf32, #tpu.memory_space<vmem>>, %arg3: memref<1x26xf32, #tpu.memory_space<vmem>>, %arg4: memref<8x26xf32, #tpu.memory_space<vmem>>) attributes {dimension_semantics = [#tpu.dimension_semantics<parallel>], iteration_bounds = array<i64: 1>, scalar_prefetch = 0 : i64, scratch_operands = 0 : i64, tpu.core_type = #tpu.core_type<tc>, window_params = [{transform_indices = @transform_0, window_bounds = array<i64: 8, 960>}, {pipeline_mode = #tpu.pipeline_mode<synchronous>, transform_indices = @transform_1, window_bounds = array<i64: 960, 26>}, {pipeline_mode = #tpu.pipeline_mode<synchronous>, transform_indices = @transform_2, window_bounds = array<i64: 1, 26>}, {transform_indices = @transform_3, window_bounds = array<i64: 8, 26>}]} {
    %c0 = arith.constant 0 : index
    %c0_0 = arith.constant 0 : index
    %0 = vector.load %arg1[%c0, %c0_0] : memref<8x960xf32, #tpu.memory_space<vmem>>, vector<8x960xf32>
    %c0_1 = arith.constant 0 : index
    %c0_2 = arith.constant 0 : index
    %1 = vector.load %arg2[%c0_1, %c0_2] : memref<960x26xf32, #tpu.memory_space<vmem>>, vector<960x26xf32>
    %cst = arith.constant dense<0.000000e+00> : vector<8x26xf32>
    %2 = tpu.matmul %0, %1, %cst {dimension_numbers = #tpu.dot_dimension_numbers<[1], [0], [0], [1], [0, 0, 1, 1], [], []>} : vector<8x960xf32>, vector<960x26xf32>, vector<8x26xf32> -> vector<8x26xf32>
    %c0_3 = arith.constant 0 : index
    %c0_4 = arith.constant 0 : index
    %3 = vector.load %arg3[%c0_3, %c0_4] : memref<1x26xf32, #tpu.memory_space<vmem>>, vector<1x26xf32>
    %4 = vector.broadcast %3 : vector<1x26xf32> to vector<8x26xf32>
    %5 = arith.addf %2, %4 : vector<8x26xf32>
    %c0_5 = arith.constant 0 : index
    %c0_6 = arith.constant 0 : index
    %6 = vector.load %arg4[%c0_5, %c0_6] : memref<8x26xf32, #tpu.memory_space<vmem>>, vector<8x26xf32>
    tpu.vector_store %arg4[%c0_5, %c0_6], %5 {strides = array<i32>} : memref<8x26xf32, #tpu.memory_space<vmem>>, vector<8x26xf32>,
    return
  }
  func.func @transform_0(%arg0: i32) -> (i32, i32) {
    %c0_i32 = arith.constant 0 : i32
    %c0_i32_0 = arith.constant 0 : i32
    return %arg0, %c0_i32 : i32, i32
  }
  func.func @transform_1(%arg0: i32) -> (i32, i32) {
    %c0_i32 = arith.constant 0 : i32
    %c0_i32_0 = arith.constant 0 : i32
    %c0_i32_1 = arith.constant 0 : i32
    return %c0_i32, %c0_i32_0 : i32, i32
  }
  func.func @transform_2(%arg0: i32) -> (i32, i32) {
    %c0_i32 = arith.constant 0 : i32
    %c0_i32_0 = arith.constant 0 : i32
    %c0_i32_1 = arith.constant 0 : i32
    return %c0_i32, %c0_i32_0 : i32, i32
  }
  func.func @transform_3(%arg0: i32) -> (i32, i32) {
    %c0_i32 = arith.constant 0 : i32
    %c0_i32_0 = arith.constant 0 : i32
    return %arg0, %c0_i32 : i32, i32
  }
}

</mosaic_0001>

<bundles_post_ra>
// kernel: cnn_forward.3
= control target key start
LH: loop header
LB: loop body
LE: loop exit
PB: predicated region body
PF: predicated region fallthrough
CT: control target
= control target key end

     0   :  { %vm259_vm0 = vcmask 1040384   ;;  %vm78_vm1 = vcmask 203776   ;;  %vm969_vm2 = vmmov 1   ;;  %vm710_vm4 = vcmask 130048   ;;  %s1382_s1 = inlined_call_operand.vmem [shape: f32[25,16], index: 1, kind: input, shape index: {}]   ;;  %s1383_s0 = inlined_call_operand.vmem [shape: f32[4,120,25], index: 0, kind: input, shape index: {}]   ;;  %s1384_s2 = inlined_call_operand.vmem [shape: f32[1,16], index: 2, kind: input, shape index: {}]   ;;  %s1385_s3 = inlined_call_operand.vmem [shape: f32[120,16], index: 3, kind: output, shape index: {}]  }
   0x1   :  { %v74_v0 = vld [vmem:[%s1382_s1] sm:$0xff]  ;;  %v75_v1 = vld [vmem:[%s1382_s1 + $0x8] sm:$0xff]  ;;  %v76_v2 = vld [vmem:[%s1382_s1 + $0x10] sm:$0xff] }
   0x2   :  { %v954_v3 = vpack.c.bf16 %v75_v1, %v74_v0  ;;  %v77_v4 = vld [vmem:[%s1382_s1 + $0x18] sm:$0x1]  ;;  %v14_v5 = vld [vmem:[%s1383_s0] sm:$0xff]  ;;  %vm959_vm3 = vmpackc.low %vm259_vm0, %vm969_vm2 }
   0x3   :  { %v958_v6 = vpack.c.bf16 %v77_v4, %v76_v2  ;;  %864 = vmatprep.mubr.msk.f32.mxu0 %vm78_vm1, %v14_v5  ;;  %v44_v7 = vld [vmem:[%s1383_s0 + $0xf0] sm:$0xff]  ;;  %v15_v8 = vld [vmem:[%s1383_s0 + $0x8] sm:$0xff]  ;;  %v45_v9 = vld [vmem:[%s1383_s0 + $0xf8] sm:$0xff] }
   0x4   :  { %955 = vmatprep.subr.bf16.mxu0 %v954_v3  ;;  %964 = vmatprep.subr.bf16.mxu1 %v954_v3  ;;  %v16_v10 = vld [vmem:[%s1383_s0 + $0x10] sm:$0xff]  ;;  %v46_v11 = vld [vmem:[%s1383_s0 + $0x100] sm:$0xff]  ;;  %v17_v12 = vld [vmem:[%s1383_s0 + $0x18] sm:$0xff] }
   0x5   :  { %957 = vmatpush3.bf16.msra.mxu0 %v954_v3  ;;  %966 = vmatpush3.bf16.msra.mxu1 %v954_v3  ;;  %v47_v13 = vld [vmem:[%s1383_s0 + $0x108] sm:$0xff]  ;;  %v18_v14 = vld [vmem:[%s1383_s0 + $0x20] sm:$0xff]  ;;  %v48_v15 = vld [vmem:[%s1383_s0 + $0x110] sm:$0xff] }
   0x6   :  { %960 = vmatprep.subr.msk.bf16.mxu0 %vm959_vm3, %v958_v6  ;;  %965 = vmatprep.subr.msk.bf16.mxu1 %vm959_vm3, %v958_v6  ;;  %v19_v16 = vld [vmem:[%s1383_s0 + $0x28] sm:$0xff]  ;;  %v49_v17 = vld [vmem:[%s1383_s0 + $0x118] sm:$0xff]  ;;  %v20_v18 = vld [vmem:[%s1383_s0 + $0x30] sm:$0xff] }
   0x7   :  { %909 = vmatprep.mubr.msk.f32.mxu1 %vm78_vm1, %v44_v7  ;;  %v50_v19 = vld [vmem:[%s1383_s0 + $0x120] sm:$0xff]  ;;  %v21_v20 = vld [vmem:[%s1383_s0 + $0x38] sm:$0xff]  ;;  %v51_v21 = vld [vmem:[%s1383_s0 + $0x128] sm:$0xff] }
   0x8   :  { %v22_v22 = vld [vmem:[%s1383_s0 + $0x40] sm:$0xff]  ;;  %v52_v23 = vld [vmem:[%s1383_s0 + $0x130] sm:$0xff]  ;;  %v23_v24 = vld [vmem:[%s1383_s0 + $0x48] sm:$0xff] }
   0x9   :  { %963 = vmatpush3.bf16.msk.msra.mxu0 %vm959_vm3, %v958_v6  ;;  %967 = vmatpush3.bf16.msk.msra.mxu1 %vm959_vm3, %v958_v6  ;;  %v53_v25 = vld [vmem:[%s1383_s0 + $0x138] sm:$0xff]  ;;  %v24_v26 = vld [vmem:[%s1383_s0 + $0x50] sm:$0xff]  ;;  %v54_v27 = vld [vmem:[%s1383_s0 + $0x140] sm:$0xff] }
   0xa   :  { %v25_v28 = vld [vmem:[%s1383_s0 + $0x58] sm:$0xff]  ;;  %v55_v29 = vld [vmem:[%s1383_s0 + $0x148] sm:$0xff]  ;;  %v26_v30 = vld [vmem:[%s1383_s0 + $0x60] sm:$0xff] }
   0xb   :  { %v56_v31 = vld [vmem:[%s1383_s0 + $0x150] sm:$0xff]  ;;  %v27_v32 = vld [vmem:[%s1383_s0 + $0x68] sm:$0xff]  ;;  %v57_v33 = vld [vmem:[%s1383_s0 + $0x158] sm:$0xff] }
   0xc   :  { %865 = vmatmul.mubr.msk.f32.vlgmr.msra.gmra.mrb[0].mxu0 %vm78_vm1, %v15_v8  ;;  %910 = vmatmul.mubr.msk.f32.vlgmr.msra.gmra.mrb[0].mxu1 %vm78_vm1, %v45_v9  ;;  %v28_v34 = vld [vmem:[%s1383_s0 + $0x70] sm:$0xff]  ;;  %v58_v35 = vld [vmem:[%s1383_s0 + $0x160] sm:$0xff]  ;;  %v29_v36 = vld [vmem:[%s1383_s0 + $0x78] sm:$0xff] }
   0xd   :  { %867 = vmatprep.mubr.msk.f32.mxu0 %vm78_vm1, %v16_v10  ;;  %912 = vmatprep.mubr.msk.f32.mxu1 %vm78_vm1, %v46_v11  ;;  %v59_v37 = vld [vmem:[%s1383_s0 + $0x168] sm:$0xff]  ;;  %v30_v38 = vld [vmem:[%s1383_s0 + $0x80] sm:$0xff]  ;;  %v60_v39 = vld [vmem:[%s1383_s0 + $0x170] sm:$0xff] }
   0xe   :  { %v31_v40 = vld [vmem:[%s1383_s0 + $0x88] sm:$0xff]  ;;  %v61_v41 = vld [vmem:[%s1383_s0 + $0x178] sm:$0xff]  ;;  %v32_v42 = vld [vmem:[%s1383_s0 + $0x90] sm:$0xff] }
   0xf   :  { %v62_v43 = vld [vmem:[%s1383_s0 + $0x180] sm:$0xff]  ;;  %v33_v44 = vld [vmem:[%s1383_s0 + $0x98] sm:$0xff]  ;;  %v63_v45 = vld [vmem:[%s1383_s0 + $0x188] sm:$0xff] }
  0x10   :  { %868 = vmatmul.mubr.msk.f32.gmra.mrb[2].mxu0 %vm78_vm1, %v17_v12  ;;  %913 = vmatmul.mubr.msk.f32.gmra.mrb[2].mxu1 %vm78_vm1, %v47_v13  ;;  %v34_v46 = vld [vmem:[%s1383_s0 + $0xa0] sm:$0xff]  ;;  %v64_v47 = vld [vmem:[%s1383_s0 + $0x190] sm:$0xff]  ;;  %v35_v48 = vld [vmem:[%s1383_s0 + $0xa8] sm:$0xff] }
  0x11   :  { %870 = vmatprep.mubr.msk.f32.mxu0 %vm78_vm1, %v18_v14  ;;  %915 = vmatprep.mubr.msk.f32.mxu1 %vm78_vm1, %v48_v15  ;;  %v65_v49 = vld [vmem:[%s1383_s0 + $0x198] sm:$0xff]  ;;  %v36_v50 = vld [vmem:[%s1383_s0 + $0xb0] sm:$0xff]  ;;  %v66_v51 = vld [vmem:[%s1383_s0 + $0x1a0] sm:$0xff] }
  0x12   :  { %v37_v52 = vld [vmem:[%s1383_s0 + $0xb8] sm:$0xff]  ;;  %v67_v53 = vld [vmem:[%s1383_s0 + $0x1a8] sm:$0xff]  ;;  %v38_v54 = vld [vmem:[%s1383_s0 + $0xc0] sm:$0xff] }
  0x13   :  { %v68_v55 = vld [vmem:[%s1383_s0 + $0x1b0] sm:$0xff]  ;;  %v39_v56 = vld [vmem:[%s1383_s0 + $0xc8] sm:$0xff]  ;;  %v69_v57 = vld [vmem:[%s1383_s0 + $0x1b8] sm:$0xff] }
  0x14   :  { %871 = vmatmul.mubr.msk.f32.gmra.mrb[4].mxu0 %vm78_vm1, %v19_v16  ;;  %916 = vmatmul.mubr.msk.f32.gmra.mrb[4].mxu1 %vm78_vm1, %v49_v17  ;;  %v40_v58 = vld [vmem:[%s1383_s0 + $0xd0] sm:$0xff]  ;;  %v70_v59 = vld [vmem:[%s1383_s0 + $0x1c0] sm:$0xff]  ;;  %v41_v60 = vld [vmem:[%s1383_s0 + $0xd8] sm:$0xff] }
  0x15   :  { %873 = vmatprep.mubr.msk.f32.mxu0 %vm78_vm1, %v20_v18  ;;  %918 = vmatprep.mubr.msk.f32.mxu1 %vm78_vm1, %v50_v19  ;;  %v71_v61 = vld [vmem:[%s1383_s0 + $0x1c8] sm:$0xff]  ;;  %v42_v62 = vld [vmem:[%s1383_s0 + $0xe0] sm:$0xff]  ;;  %v72_v63 = vld [vmem:[%s1383_s0 + $0x1d0] sm:$0xff] }
  0x16   :  { %v43_v0 = vld [vmem:[%s1383_s0 + $0xe8] sm:$0xff]  ;;  %v73_v1 = vld [vmem:[%s1383_s0 + $0x1d8] sm:$0xff] }
  0x18   :  { %874 = vmatmul.mubr.msk.f32.gmra.mrb[6].mxu0 %vm78_vm1, %v21_v20  ;;  %919 = vmatmul.mubr.msk.f32.gmra.mrb[6].mxu1 %vm78_vm1, %v51_v21 }
  0x19   :  { %876 = vmatprep.mubr.msk.f32.mxu0 %vm78_vm1, %v22_v22  ;;  %921 = vmatprep.mubr.msk.f32.mxu1 %vm78_vm1, %v52_v23 }
  0x1c   :  { %877 = vmatmul.mubr.msk.f32.gmra.mrb[8].mxu0 %vm78_vm1, %v23_v24  ;;  %922 = vmatmul.mubr.msk.f32.gmra.mrb[8].mxu1 %vm78_vm1, %v53_v25 }
  0x1d   :  { %879 = vmatprep.mubr.msk.f32.mxu0 %vm78_vm1, %v24_v26  ;;  %924 = vmatprep.mubr.msk.f32.mxu1 %vm78_vm1, %v54_v27 }
  0x20   :  { %880 = vmatmul.mubr.msk.f32.gmra.mrb[10].mxu0 %vm78_vm1, %v25_v28  ;;  %925 = vmatmul.mubr.msk.f32.gmra.mrb[10].mxu1 %vm78_vm1, %v55_v29 }
  0x21   :  { %882 = vmatprep.mubr.msk.f32.mxu0 %vm78_vm1, %v26_v30  ;;  %927 = vmatprep.mubr.msk.f32.mxu1 %vm78_vm1, %v56_v31 }
  0x24   :  { %883 = vmatmul.mubr.msk.f32.gmra.mrb[12].mxu0 %vm78_vm1, %v27_v32  ;;  %928 = vmatmul.mubr.msk.f32.gmra.mrb[12].mxu1 %vm78_vm1, %v57_v33 }
  0x25   :  { %885 = vmatprep.mubr.msk.f32.mxu0 %vm78_vm1, %v28_v34  ;;  %930 = vmatprep.mubr.msk.f32.mxu1 %vm78_vm1, %v58_v35 }
  0x28   :  { %886 = vmatmul.mubr.msk.f32.gmra.mrb[14].mxu0 %vm78_vm1, %v29_v36  ;;  %931 = vmatmul.mubr.msk.f32.gmra.mrb[14].mxu1 %vm78_vm1, %v59_v37  ;;  %v1285_v36 = vld [vmem:[%s1384_s2] ss:$0 sm:$0xff] }
  0x29   :  { %888 = vmatprep.mubr.msk.f32.mxu0 %vm78_vm1, %v30_v38  ;;  %933 = vmatprep.mubr.msk.f32.mxu1 %vm78_vm1, %v60_v39 }
  0x2c   :  { %889 = vmatmul.mubr.msk.f32.gmra.mrb[16].mxu0 %vm78_vm1, %v31_v40  ;;  %934 = vmatmul.mubr.msk.f32.gmra.mrb[16].mxu1 %vm78_vm1, %v61_v41 }
  0x2d   :  { %891 = vmatprep.mubr.msk.f32.mxu0 %vm78_vm1, %v32_v42  ;;  %936 = vmatprep.mubr.msk.f32.mxu1 %vm78_vm1, %v62_v43 }
  0x30   :  { %892 = vmatmul.mubr.msk.f32.gmra.mrb[18].mxu0 %vm78_vm1, %v33_v44  ;;  %937 = vmatmul.mubr.msk.f32.gmra.mrb[18].mxu1 %vm78_vm1, %v63_v45 }
  0x31   :  { %894 = vmatprep.mubr.msk.f32.mxu0 %vm78_vm1, %v34_v46  ;;  %939 = vmatprep.mubr.msk.f32.mxu1 %vm78_vm1, %v64_v47 }
  0x34   :  { %895 = vmatmul.mubr.msk.f32.gmra.mrb[20].mxu0 %vm78_vm1, %v35_v48  ;;  %940 = vmatmul.mubr.msk.f32.gmra.mrb[20].mxu1 %vm78_vm1, %v65_v49 }
  0x35   :  { %897 = vmatprep.mubr.msk.f32.mxu0 %vm78_vm1, %v36_v50  ;;  %942 = vmatprep.mubr.msk.f32.mxu1 %vm78_vm1, %v66_v51 }
  0x38   :  { %898 = vmatmul.mubr.msk.f32.gmra.mrb[22].mxu0 %vm78_vm1, %v37_v52  ;;  %943 = vmatmul.mubr.msk.f32.gmra.mrb[22].mxu1 %vm78_vm1, %v67_v53 }
  0x39   :  { %900 = vmatprep.mubr.msk.f32.mxu0 %vm78_vm1, %v38_v54  ;;  %945 = vmatprep.mubr.msk.f32.mxu1 %vm78_vm1, %v68_v55 }
  0x3c   :  { %901 = vmatmul.mubr.msk.f32.gmra.mrb[24].mxu0 %vm78_vm1, %v39_v56  ;;  %946 = vmatmul.mubr.msk.f32.gmra.mrb[24].mxu1 %vm78_vm1, %v69_v57 }
  0x3d   :  { %903 = vmatprep.mubr.msk.f32.mxu0 %vm78_vm1, %v40_v58  ;;  %948 = vmatprep.mubr.msk.f32.mxu1 %vm78_vm1, %v70_v59 }
  0x40   :  { %904 = vmatmul.mubr.msk.f32.gmra.mrb[26].mxu0 %vm78_vm1, %v41_v60  ;;  %949 = vmatmul.mubr.msk.f32.gmra.mrb[26].mxu1 %vm78_vm1, %v71_v61 }
  0x41   :  { %906 = vmatprep.mubr.msk.f32.mxu0 %vm78_vm1, %v42_v62  ;;  %951 = vmatprep.mubr.msk.f32.mxu1 %vm78_vm1, %v72_v63 }
  0x44   :  { %907 = vmatmul.mubr.msk.f32.gmra.mrb[28].mxu0 %vm78_vm1, %v43_v0  ;;  %952 = vmatmul.mubr.msk.f32.gmra.mrb[28].mxu1 %vm78_vm1, %v73_v1 }
  0xdf   :  { %v866_v2 = vpop.f32.mrb[0].mxu0  ;;  %v911_v3 = vpop.f32.mrb[0].mxu1 }
  0xe0   :  { %v329_v4 = vpop.f32.mrb[1].mxu0  ;;  %v479_v5 = vpop.f32.mrb[1].mxu1 }
  0xe3   :  { %v869_v6 = vpop.f32.mrb[2].mxu0  ;;  %v914_v7 = vpop.f32.mrb[2].mxu1 }
  0xe4   :  { %v339_v8 = vpop.f32.mrb[3].mxu0  ;;  %v489_v9 = vpop.f32.mrb[3].mxu1 }
  0xe7   :  { %v1242_v10 = vpop.f32.mrb[4].mxu0  ;;  %v1244_v11 = vpop.f32.mrb[4].mxu1 }
  0xe8   :  { %v349_v12 = vpop.f32.mrb[5].mxu0  ;;  %v499_v13 = vpop.f32.mrb[5].mxu1 }
  0xeb   :  { %v1246_v14 = vpop.f32.mrb[6].mxu0  ;;  %v1248_v15 = vpop.f32.mrb[6].mxu1 }
  0xec   :  { %v1250_v16 = vpop.f32.mrb[7].mxu0  ;;  %v1252_v17 = vpop.f32.mrb[7].mxu1 }
  0xef   :  { %v1254_v18 = vpop.f32.mrb[8].mxu0  ;;  %v1256_v19 = vpop.f32.mrb[8].mxu1 }
  0xf0   :  { %v1258_v20 = vpop.f32.mrb[9].mxu0  ;;  %v1260_v21 = vpop.f32.mrb[9].mxu1 }
  0xf3   :  { %v1262_v22 = vpop.f32.mrb[10].mxu0  ;;  %v1264_v23 = vpop.f32.mrb[10].mxu1 }
  0xf4   :  { %v1266_v24 = vpop.f32.mrb[11].mxu0  ;;  %v1268_v25 = vpop.f32.mrb[11].mxu1 }
  0xf7   :  { %v1270_v26 = vpop.f32.mrb[12].mxu0  ;;  %v1272_v27 = vpop.f32.mrb[12].mxu1 }
  0xf8   :  { %v1274_v28 = vpop.f32.mrb[13].mxu0  ;;  %v1276_v29 = vpop.f32.mrb[13].mxu1 }
  0xfb   :  { %v887_v30 = vpop.f32.mrb[14].mxu0  ;;  %v932_v31 = vpop.f32.mrb[14].mxu1 }
  0xfc   :  { %v628_v32 = vmax.f32 %v329_v4, %v887_v30  ;;  %v643_v33 = vmax.f32 %v479_v5, %v932_v31  ;;  %v1278_v34 = vpop.f32.mrb[15].mxu0  ;;  %v1280_v35 = vpop.f32.mrb[15].mxu1 }
  0xfe   :  { %v658_v37 = vmax.f32 %v628_v32, %v643_v33 }
  0xff   :  { %v890_v38 = vpop.f32.mrb[16].mxu0  ;;  %v935_v39 = vpop.f32.mrb[16].mxu1 }
 0x100   :  { %v680_v40 = vadd.f32 %v1285_v36, %v658_v37  ;;  %v630_v41 = vmax.f32 %v339_v8, %v890_v38  ;;  %v645_v42 = vmax.f32 %v489_v9, %v935_v39  ;;  %v409_v43 = vpop.f32.mrb[17].mxu0  ;;  %v559_v44 = vpop.f32.mrb[17].mxu1 }
 0x101   :  { %v629_v45 = vmax.f32 %v866_v2, %v409_v43  ;;  %v644_v46 = vmax.f32 %v911_v3, %v559_v44 }
 0x102   :  { %v695_v47 = vmax.f32 %v680_v40, 0.0  ;;  %v660_v48 = vmax.f32 %v630_v41, %v645_v42 }
 0x103   :  { %v659_v49 = vmax.f32 %v629_v45, %v644_v46  ;;  %v893_v50 = vpop.f32.mrb[18].mxu0  ;;  %v938_v51 = vpop.f32.mrb[18].mxu1 }
 0x104   :  { %711 = vst.msk [vmem:[%s1385_s3] sm:$0xff] %vm710_vm4, %v695_v47  ;;  %v682_v52 = vadd.f32 %v1285_v36, %v660_v48  ;;  %v632_v53 = vmax.f32 %v349_v12, %v893_v50  ;;  %v647_v54 = vmax.f32 %v499_v13, %v938_v51  ;;  %v419_v55 = vpop.f32.mrb[19].mxu0  ;;  %v569_v56 = vpop.f32.mrb[19].mxu1 }
 0x105   :  { %v681_v57 = vadd.f32 %v1285_v36, %v659_v49  ;;  %v631_v58 = vmax.f32 %v869_v6, %v419_v55  ;;  %v646_v59 = vmax.f32 %v914_v7, %v569_v56 }
 0x106   :  { %v697_v60 = vmax.f32 %v682_v52, 0.0  ;;  %v662_v61 = vmax.f32 %v632_v53, %v647_v54 }
 0x107   :  { %v696_v62 = vmax.f32 %v681_v57, 0.0  ;;  %v661_v63 = vmax.f32 %v631_v58, %v646_v59  ;;  %v896_v0 = vpop.f32.mrb[20].mxu0  ;;  %v941_v1 = vpop.f32.mrb[20].mxu1 }
 0x108   :  { %713 = vst.msk [vmem:[%s1385_s3 + $0x10] sm:$0xff] %vm710_vm4, %v697_v60  ;;  %v684_v2 = vadd.f32 %v1285_v36, %v662_v61  ;;  %v634_v3 = vmax.f32 %v1250_v16, %v896_v0  ;;  %v649_v4 = vmax.f32 %v1252_v17, %v941_v1  ;;  %v429_v5 = vpop.f32.mrb[21].mxu0  ;;  %v579_v6 = vpop.f32.mrb[21].mxu1 }
 0x109   :  { %712 = vst.msk [vmem:[%s1385_s3 + $0x8] sm:$0xff] %vm710_vm4, %v696_v62  ;;  %v683_v7 = vadd.f32 %v1285_v36, %v661_v63  ;;  %v633_v8 = vmax.f32 %v1242_v10, %v429_v5  ;;  %v648_v9 = vmax.f32 %v1244_v11, %v579_v6 }
 0x10a   :  { %v699_v12 = vmax.f32 %v684_v2, 0.0  ;;  %v664_v13 = vmax.f32 %v634_v3, %v649_v4 }
 0x10b   :  { %v698_v30 = vmax.f32 %v683_v7, 0.0  ;;  %v663_v31 = vmax.f32 %v633_v8, %v648_v9  ;;  %v899_v16 = vpop.f32.mrb[22].mxu0  ;;  %v944_v32 = vpop.f32.mrb[22].mxu1 }
 0x10c   :  { %715 = vst.msk [vmem:[%s1385_s3 + $0x20] sm:$0xff] %vm710_vm4, %v699_v12  ;;  %v686_v17 = vadd.f32 %v1285_v36, %v664_v13  ;;  %v636_v33 = vmax.f32 %v1258_v20, %v899_v16  ;;  %v651_v37 = vmax.f32 %v1260_v21, %v944_v32  ;;  %v439_v10 = vpop.f32.mrb[23].mxu0  ;;  %v589_v38 = vpop.f32.mrb[23].mxu1 }
 0x10d   :  { %714 = vst.msk [vmem:[%s1385_s3 + $0x18] sm:$0xff] %vm710_vm4, %v698_v30  ;;  %v685_v11 = vadd.f32 %v1285_v36, %v663_v31  ;;  %v635_v39 = vmax.f32 %v1246_v14, %v439_v10  ;;  %v650_v40 = vmax.f32 %v1248_v15, %v589_v38 }
 0x10e   :  { %v701_v41 = vmax.f32 %v686_v17, 0.0  ;;  %v666_v42 = vmax.f32 %v636_v33, %v651_v37 }
 0x10f   :  { %v700_v43 = vmax.f32 %v685_v11, 0.0  ;;  %v665_v44 = vmax.f32 %v635_v39, %v650_v40  ;;  %v902_v20 = vpop.f32.mrb[24].mxu0  ;;  %v947_v45 = vpop.f32.mrb[24].mxu1 }
 0x110   :  { %717 = vst.msk [vmem:[%s1385_s3 + $0x30] sm:$0xff] %vm710_vm4, %v701_v41  ;;  %v688_v21 = vadd.f32 %v1285_v36, %v666_v42  ;;  %v638_v46 = vmax.f32 %v1266_v24, %v902_v20  ;;  %v653_v47 = vmax.f32 %v1268_v25, %v947_v45  ;;  %v449_v14 = vpop.f32.mrb[25].mxu0  ;;  %v599_v48 = vpop.f32.mrb[25].mxu1 }
 0x111   :  { %716 = vst.msk [vmem:[%s1385_s3 + $0x28] sm:$0xff] %vm710_vm4, %v700_v43  ;;  %v687_v15 = vadd.f32 %v1285_v36, %v665_v44  ;;  %v637_v49 = vmax.f32 %v1254_v18, %v449_v14  ;;  %v652_v50 = vmax.f32 %v1256_v19, %v599_v48 }
 0x112   :  { %v703_v51 = vmax.f32 %v688_v21, 0.0  ;;  %v668_v52 = vmax.f32 %v638_v46, %v653_v47 }
 0x113   :  { %v702_v53 = vmax.f32 %v687_v15, 0.0  ;;  %v667_v54 = vmax.f32 %v637_v49, %v652_v50  ;;  %v905_v24 = vpop.f32.mrb[26].mxu0  ;;  %v950_v55 = vpop.f32.mrb[26].mxu1 }
 0x114   :  { %719 = vst.msk [vmem:[%s1385_s3 + $0x40] sm:$0xff] %vm710_vm4, %v703_v51  ;;  %v690_v25 = vadd.f32 %v1285_v36, %v668_v52  ;;  %v640_v56 = vmax.f32 %v1274_v28, %v905_v24  ;;  %v655_v57 = vmax.f32 %v1276_v29, %v950_v55  ;;  %v459_v18 = vpop.f32.mrb[27].mxu0  ;;  %v609_v58 = vpop.f32.mrb[27].mxu1 }
 0x115   :  { %718 = vst.msk [vmem:[%s1385_s3 + $0x38] sm:$0xff] %vm710_vm4, %v702_v53  ;;  %v689_v19 = vadd.f32 %v1285_v36, %v667_v54  ;;  %v639_v59 = vmax.f32 %v1262_v22, %v459_v18  ;;  %v654_v60 = vmax.f32 %v1264_v23, %v609_v58 }
 0x116   :  { %v705_v61 = vmax.f32 %v690_v25, 0.0  ;;  %v670_v62 = vmax.f32 %v640_v56, %v655_v57 }
 0x117   :  { %v704_v63 = vmax.f32 %v689_v19, 0.0  ;;  %v669_v0 = vmax.f32 %v639_v59, %v654_v60  ;;  %v908_v28 = vpop.f32.mrb[28].mxu0  ;;  %v953_v1 = vpop.f32.mrb[28].mxu1 }
 0x118   :  { %721 = vst.msk [vmem:[%s1385_s3 + $0x50] sm:$0xff] %vm710_vm4, %v705_v61  ;;  %v692_v29 = vadd.f32 %v1285_v36, %v670_v62  ;;  %v642_v2 = vmax.f32 %v1278_v34, %v908_v28  ;;  %v657_v3 = vmax.f32 %v1280_v35, %v953_v1  ;;  %v469_v22 = vpop.f32.mrb[29].mxu0  ;;  %v619_v4 = vpop.f32.mrb[29].mxu1 }
 0x119   :  { %720 = vst.msk [vmem:[%s1385_s3 + $0x48] sm:$0xff] %vm710_vm4, %v704_v63  ;;  %v691_v23 = vadd.f32 %v1285_v36, %v669_v0  ;;  %v641_v5 = vmax.f32 %v1270_v26, %v469_v22  ;;  %v656_v6 = vmax.f32 %v1272_v27, %v619_v4 }
 0x11a   :  { %v707_v7 = vmax.f32 %v692_v29, 0.0  ;;  %v672_v8 = vmax.f32 %v642_v2, %v657_v3 }
 0x11b   :  { %v706_v9 = vmax.f32 %v691_v23, 0.0  ;;  %v671_v12 = vmax.f32 %v641_v5, %v656_v6 }
 0x11c   :  { %723 = vst.msk [vmem:[%s1385_s3 + $0x60] sm:$0xff] %vm710_vm4, %v707_v7  ;;  %v694_v34 = vadd.f32 %v1285_v36, %v672_v8 }
 0x11d   :  { %722 = vst.msk [vmem:[%s1385_s3 + $0x58] sm:$0xff] %vm710_vm4, %v706_v9  ;;  %v693_v26 = vadd.f32 %v1285_v36, %v671_v12 }
 0x11e   :  { %v709_v35 = vmax.f32 %v694_v34, 0.0 }
 0x11f   :  { %v708_v27 = vmax.f32 %v693_v26, 0.0 }
 0x120   :  { %725 = vst.msk [vmem:[%s1385_s3 + $0x70] sm:$0xff] %vm710_vm4, %v709_v35 }
 0x121   :  { %724 = vst.msk [vmem:[%s1385_s3 + $0x68] sm:$0xff] %vm710_vm4, %v708_v27 }

// kernel: cnn_forward.4
= control target key start
LH: loop header
LB: loop body
LE: loop exit
PB: predicated region body
PF: predicated region fallthrough
CT: control target
= control target key end

     0   :  { %v660_v0 = vmov 0.0|0.0   ;;  %vm128_vm0 = vcmask 130048   ;;  %vm494_vm1 = vcmask 523264   ;;  %s1094_s1 = inlined_call_operand.vmem [shape: f32[400,64], index: 1, kind: input, shape index: {}]   ;;  %s1095_s0 = inlined_call_operand.vmem [shape: f32[4,32,400], index: 0, kind: input, shape index: {}]   ;;  %s1096_s2 = inlined_call_operand.vmem [shape: f32[1,64], index: 2, kind: input, shape index: {}]   ;;  %s1097_s3 = inlined_call_operand.vmem [shape: f32[32,64], index: 3, kind: output, shape index: {}]  }
   0x1   :  { %632 = vmatprep.subr.bf16.mxu1 %v660_v0  ;;  %v94_v1 = vld [vmem:[%s1094_s1 + $0x80] sm:$0xff]  ;;  %v95_v2 = vld [vmem:[%s1094_s1 + $0x88] sm:$0xff]  ;;  %v96_v10 = vld [vmem:[%s1094_s1 + $0x90] sm:$0xff] }
   0x2   :  { %v110_v3 = vld [vmem:[%s1094_s1 + $0x100] sm:$0xff]  ;;  %v600_v4 = vpack.c.bf16 %v95_v2, %v94_v1  ;;  %v111_v5 = vld [vmem:[%s1094_s1 + $0x108] sm:$0xff]  ;;  %v97_v11 = vld [vmem:[%s1094_s1 + $0x98] sm:$0xff] }
   0x3   :  { %v78_v6 = vld [vmem:[%s1094_s1] sm:$0xff]  ;;  %v79_v7 = vld [vmem:[%s1094_s1 + $0x8] sm:$0xff]  ;;  %v633_v8 = vpack.c.bf16 %v111_v5, %v110_v3  ;;  %v112_v12 = vld [vmem:[%s1094_s1 + $0x110] sm:$0xff]  ;;  %v604_v13 = vpack.c.bf16 %v97_v11, %v96_v10 }
   0x4   :  { %v602_v9 = vpack.c.bf16 %v79_v7, %v78_v6  ;;  %601 = vmatprep.subr.bf16.mxu0 %v600_v4  ;;  %v113_v14 = vld [vmem:[%s1094_s1 + $0x118] sm:$0xff]  ;;  %v80_v15 = vld [vmem:[%s1094_s1 + $0x10] sm:$0xff]  ;;  %v98_v19 = vld [vmem:[%s1094_s1 + $0xa0] sm:$0xff] }
   0x5   :  { %v81_v16 = vld [vmem:[%s1094_s1 + $0x18] sm:$0xff]  ;;  %634 = vmatpush1.bf16.msra.mxu1 %v633_v8  ;;  %v636_v17 = vpack.c.bf16 %v113_v14, %v112_v12  ;;  %v99_v20 = vld [vmem:[%s1094_s1 + $0xa8] sm:$0xff]  ;;  %v114_v21 = vld [vmem:[%s1094_s1 + $0x120] sm:$0xff] }
   0x6   :  { %603 = vmatpush3.bf16.msra.mxu0 %v602_v9  ;;  %v606_v18 = vpack.c.bf16 %v81_v16, %v80_v15  ;;  %635 = vmatprep.subr.bf16.mxu1 %v660_v0  ;;  %v608_v22 = vpack.c.bf16 %v99_v20, %v98_v19  ;;  %v115_v23 = vld [vmem:[%s1094_s1 + $0x128] sm:$0xff]  ;;  %v82_v24 = vld [vmem:[%s1094_s1 + $0x20] sm:$0xff]  ;;  %v100_v26 = vld [vmem:[%s1094_s1 + $0xb0] sm:$0xff] }
   0x7   :  { %605 = vmatprep.subr.bf16.mxu0 %v604_v13  ;;  %v83_v25 = vld [vmem:[%s1094_s1 + $0x28] sm:$0xff]  ;;  %v101_v27 = vld [vmem:[%s1094_s1 + $0xb8] sm:$0xff]  ;;  %v639_v28 = vpack.c.bf16 %v115_v23, %v114_v21  ;;  %v116_v30 = vld [vmem:[%s1094_s1 + $0x130] sm:$0xff] }
   0x8   :  { %v610_v29 = vpack.c.bf16 %v83_v25, %v82_v24  ;;  %v612_v31 = vpack.c.bf16 %v101_v27, %v100_v26  ;;  %v117_v32 = vld [vmem:[%s1094_s1 + $0x138] sm:$0xff]  ;;  %v84_v33 = vld [vmem:[%s1094_s1 + $0x30] sm:$0xff]  ;;  %v102_v35 = vld [vmem:[%s1094_s1 + $0xc0] sm:$0xff] }
   0x9   :  { %637 = vmatpush1.bf16.msra.mxu1 %v636_v17  ;;  %v85_v34 = vld [vmem:[%s1094_s1 + $0x38] sm:$0xff]  ;;  %v103_v36 = vld [vmem:[%s1094_s1 + $0xc8] sm:$0xff]  ;;  %v642_v37 = vpack.c.bf16 %v117_v32, %v116_v30  ;;  %v118_v39 = vld [vmem:[%s1094_s1 + $0x140] sm:$0xff] }
   0xa   :  { %607 = vmatpush3.bf16.msra.mxu0 %v606_v18  ;;  %638 = vmatprep.subr.bf16.mxu1 %v660_v0  ;;  %v614_v38 = vpack.c.bf16 %v85_v34, %v84_v33  ;;  %v616_v40 = vpack.c.bf16 %v103_v36, %v102_v35  ;;  %v119_v41 = vld [vmem:[%s1094_s1 + $0x148] sm:$0xff]  ;;  %v86_v42 = vld [vmem:[%s1094_s1 + $0x40] sm:$0xff]  ;;  %v104_v44 = vld [vmem:[%s1094_s1 + $0xd0] sm:$0xff] }
   0xb   :  { %609 = vmatprep.subr.bf16.mxu0 %v608_v22  ;;  %v87_v43 = vld [vmem:[%s1094_s1 + $0x48] sm:$0xff]  ;;  %v105_v45 = vld [vmem:[%s1094_s1 + $0xd8] sm:$0xff]  ;;  %v645_v46 = vpack.c.bf16 %v119_v41, %v118_v39  ;;  %v120_v48 = vld [vmem:[%s1094_s1 + $0x150] sm:$0xff] }
   0xc   :  { %v618_v47 = vpack.c.bf16 %v87_v43, %v86_v42  ;;  %v121_v49 = vld [vmem:[%s1094_s1 + $0x158] sm:$0xff]  ;;  %v15_v50 = vld [vmem:[%s1095_s0 + $0x8] sm:$0xff]  ;;  %v620_v51 = vpack.c.bf16 %v105_v45, %v104_v44  ;;  %v88_v52 = vld [vmem:[%s1094_s1 + $0x50] sm:$0xff] }
   0xd   :  { %640 = vmatpush1.bf16.msra.mxu1 %v639_v28  ;;  %v89_v53 = vld [vmem:[%s1094_s1 + $0x58] sm:$0xff]  ;;  %v106_v55 = vld [vmem:[%s1094_s1 + $0xe0] sm:$0xff]  ;;  %v107_v56 = vld [vmem:[%s1094_s1 + $0xe8] sm:$0xff]  ;;  %241 = vmatprep.mubr.f32.mxu0 %v15_v50  ;;  %v648_v57 = vpack.c.bf16 %v121_v49, %v120_v48 }
   0xe   :  { %611 = vmatpush3.bf16.msra.mxu0 %v610_v29  ;;  %641 = vmatprep.subr.bf16.mxu1 %v660_v0  ;;  %v17_v54 = vld [vmem:[%s1095_s0 + $0x18] sm:$0xff]  ;;  %v622_v58 = vpack.c.bf16 %v89_v53, %v88_v52  ;;  %v122_v59 = vld [vmem:[%s1094_s1 + $0x160] sm:$0xff]  ;;  %v624_v60 = vpack.c.bf16 %v107_v56, %v106_v55  ;;  %v123_v61 = vld [vmem:[%s1094_s1 + $0x168] sm:$0xff] }
   0xf   :  { %613 = vmatprep.subr.bf16.mxu0 %v612_v31  ;;  %503 = vmatprep.mubr.msk.f32.mxu1 %vm128_vm0, %v17_v54  ;;  %v90_v62 = vld [vmem:[%s1094_s1 + $0x60] sm:$0xff]  ;;  %v91_v63 = vld [vmem:[%s1094_s1 + $0x68] sm:$0xff]  ;;  %v108_v1 = vld [vmem:[%s1094_s1 + $0xf0] sm:$0xff]  ;;  %v651_v3 = vpack.c.bf16 %v123_v61, %v122_v59 }
  0x10   :  { %v109_v2 = vld [vmem:[%s1094_s1 + $0xf8] sm:$0xff]  ;;  %v626_v4 = vpack.c.bf16 %v91_v63, %v90_v62  ;;  %v124_v5 = vld [vmem:[%s1094_s1 + $0x170] sm:$0xff]  ;;  %v126_v12 = vld [vmem:[%s1094_s1 + $0x180] sm:$0xff] }
  0x11   :  { %643 = vmatpush1.bf16.msra.mxu1 %v642_v37  ;;  %v628_v6 = vpack.c.bf16 %v109_v2, %v108_v1  ;;  %v125_v7 = vld [vmem:[%s1094_s1 + $0x178] sm:$0xff]  ;;  %v92_v8 = vld [vmem:[%s1094_s1 + $0x70] sm:$0xff]  ;;  %v127_v13 = vld [vmem:[%s1094_s1 + $0x188] sm:$0xff] }
  0x12   :  { %615 = vmatpush3.bf16.msra.mxu0 %v614_v38  ;;  %644 = vmatprep.subr.bf16.mxu1 %v660_v0  ;;  %v93_v9 = vld [vmem:[%s1094_s1 + $0x78] sm:$0xff]  ;;  %v654_v10 = vpack.c.bf16 %v125_v7, %v124_v5  ;;  %v14_v14 = vld [vmem:[%s1095_s0] sm:$0xff]  ;;  %v657_v15 = vpack.c.bf16 %v127_v13, %v126_v12  ;;  %v19_v16 = vld [vmem:[%s1095_s0 + $0x28] sm:$0xff] }
  0x13   :  { %617 = vmatprep.subr.bf16.mxu0 %v616_v40  ;;  %v630_v11 = vpack.c.bf16 %v93_v9, %v92_v8  ;;  %v16_v17 = vld [vmem:[%s1095_s0 + $0x10] sm:$0xff]  ;;  %v18_v18 = vld [vmem:[%s1095_s0 + $0x20] sm:$0xff]  ;;  %v21_v19 = vld [vmem:[%s1095_s0 + $0x38] sm:$0xff] }
  0x14   :  { %v20_v20 = vld [vmem:[%s1095_s0 + $0x30] sm:$0xff]  ;;  %v22_v21 = vld [vmem:[%s1095_s0 + $0x40] sm:$0xff]  ;;  %v25_v22 = vld [vmem:[%s1095_s0 + $0x58] sm:$0xff] }
  0x15   :  { %646 = vmatpush1.bf16.msra.mxu1 %v645_v46  ;;  %v27_v23 = vld [vmem:[%s1095_s0 + $0x68] sm:$0xff]  ;;  %v24_v24 = vld [vmem:[%s1095_s0 + $0x50] sm:$0xff]  ;;  %v26_v25 = vld [vmem:[%s1095_s0 + $0x60] sm:$0xff] }
  0x16   :  { %619 = vmatpush3.bf16.msra.mxu0 %v618_v47  ;;  %647 = vmatprep.subr.bf16.mxu1 %v660_v0  ;;  %v29_v26 = vld [vmem:[%s1095_s0 + $0x78] sm:$0xff]  ;;  %v31_v27 = vld [vmem:[%s1095_s0 + $0x88] sm:$0xff]  ;;  %v28_v28 = vld [vmem:[%s1095_s0 + $0x70] sm:$0xff] }
  0x17   :  { %621 = vmatprep.subr.bf16.mxu0 %v620_v51  ;;  %v30_v29 = vld [vmem:[%s1095_s0 + $0x80] sm:$0xff]  ;;  %v33_v30 = vld [vmem:[%s1095_s0 + $0x98] sm:$0xff]  ;;  %v35_v31 = vld [vmem:[%s1095_s0 + $0xa8] sm:$0xff] }
  0x18   :  { %v32_v32 = vld [vmem:[%s1095_s0 + $0x90] sm:$0xff]  ;;  %v34_v33 = vld [vmem:[%s1095_s0 + $0xa0] sm:$0xff]  ;;  %v37_v34 = vld [vmem:[%s1095_s0 + $0xb8] sm:$0xff] }
  0x19   :  { %649 = vmatpush1.bf16.msra.mxu1 %v648_v57  ;;  %v39_v35 = vld [vmem:[%s1095_s0 + $0xc8] sm:$0xff]  ;;  %v36_v36 = vld [vmem:[%s1095_s0 + $0xb0] sm:$0xff]  ;;  %v38_v37 = vld [vmem:[%s1095_s0 + $0xc0] sm:$0xff] }
  0x1a   :  { %623 = vmatpush3.bf16.msra.mxu0 %v622_v58  ;;  %650 = vmatprep.subr.bf16.mxu1 %v660_v0  ;;  %v41_v38 = vld [vmem:[%s1095_s0 + $0xd8] sm:$0xff]  ;;  %v43_v39 = vld [vmem:[%s1095_s0 + $0xe8] sm:$0xff]  ;;  %v40_v40 = vld [vmem:[%s1095_s0 + $0xd0] sm:$0xff] }
  0x1b   :  { %625 = vmatprep.subr.bf16.mxu0 %v624_v60  ;;  %v42_v41 = vld [vmem:[%s1095_s0 + $0xe0] sm:$0xff]  ;;  %v45_v42 = vld [vmem:[%s1095_s0 + $0xf8] sm:$0xff]  ;;  %v47_v43 = vld [vmem:[%s1095_s0 + $0x108] sm:$0xff] }
  0x1c   :  { %v44_v44 = vld [vmem:[%s1095_s0 + $0xf0] sm:$0xff]  ;;  %v46_v45 = vld [vmem:[%s1095_s0 + $0x100] sm:$0xff]  ;;  %v49_v46 = vld [vmem:[%s1095_s0 + $0x118] sm:$0xff] }
  0x1d   :  { %652 = vmatpush1.bf16.msra.mxu1 %v651_v3  ;;  %v51_v47 = vld [vmem:[%s1095_s0 + $0x128] sm:$0xff]  ;;  %v48_v48 = vld [vmem:[%s1095_s0 + $0x110] sm:$0xff]  ;;  %v50_v49 = vld [vmem:[%s1095_s0 + $0x120] sm:$0xff] }
  0x1e   :  { %627 = vmatpush3.bf16.msra.mxu0 %v626_v4  ;;  %653 = vmatprep.subr.bf16.mxu1 %v660_v0  ;;  %v53_v50 = vld [vmem:[%s1095_s0 + $0x138] sm:$0xff]  ;;  %v55_v51 = vld [vmem:[%s1095_s0 + $0x148] sm:$0xff]  ;;  %v52_v52 = vld [vmem:[%s1095_s0 + $0x130] sm:$0xff] }
  0x1f   :  { %629 = vmatprep.subr.bf16.mxu0 %v628_v6  ;;  %v54_v53 = vld [vmem:[%s1095_s0 + $0x140] sm:$0xff]  ;;  %v57_v54 = vld [vmem:[%s1095_s0 + $0x158] sm:$0xff]  ;;  %v59_v55 = vld [vmem:[%s1095_s0 + $0x168] sm:$0xff] }
  0x20   :  { %v56_v56 = vld [vmem:[%s1095_s0 + $0x150] sm:$0xff]  ;;  %v58_v57 = vld [vmem:[%s1095_s0 + $0x160] sm:$0xff]  ;;  %v61_v58 = vld [vmem:[%s1095_s0 + $0x178] sm:$0xff] }
  0x21   :  { %655 = vmatpush1.bf16.msra.mxu1 %v654_v10  ;;  %v63_v59 = vld [vmem:[%s1095_s0 + $0x188] sm:$0xff]  ;;  %v60_v60 = vld [vmem:[%s1095_s0 + $0x170] sm:$0xff]  ;;  %v62_v61 = vld [vmem:[%s1095_s0 + $0x180] sm:$0xff] }
  0x22   :  { %631 = vmatpush3.bf16.msra.mxu0 %v630_v11  ;;  %656 = vmatprep.subr.bf16.mxu1 %v660_v0  ;;  %v23_v0 = vld [vmem:[%s1095_s0 + $0x48] sm:$0xff]  ;;  %v65_v62 = vld [vmem:[%s1095_s0 + $0x198] sm:$0xff]  ;;  %v64_v1 = vld [vmem:[%s1095_s0 + $0x190] sm:$0xff] }
  0x23   :  { %v67_v63 = vld [vmem:[%s1095_s0 + $0x1a8] sm:$0xff]  ;;  %v66_v2 = vld [vmem:[%s1095_s0 + $0x1a0] sm:$0xff]  ;;  %v69_v3 = vld [vmem:[%s1095_s0 + $0x1b8] sm:$0xff] }
  0x24   :  { %v71_v4 = vld [vmem:[%s1095_s0 + $0x1c8] sm:$0xff]  ;;  %v68_v5 = vld [vmem:[%s1095_s0 + $0x1b0] sm:$0xff]  ;;  %v70_v6 = vld [vmem:[%s1095_s0 + $0x1c0] sm:$0xff] }
  0x25   :  { %242 = vmatmul.mubr.f32.vlgmr.msra.gmra.mrb[0].mxu0 %v14_v14  ;;  %658 = vmatpush1.bf16.msra.mxu1 %v657_v15  ;;  %v73_v7 = vld [vmem:[%s1095_s0 + $0x1d8] sm:$0xff]  ;;  %v75_v8 = vld [vmem:[%s1095_s0 + $0x1e8] sm:$0xff]  ;;  %v72_v9 = vld [vmem:[%s1095_s0 + $0x1d0] sm:$0xff] }
  0x26   :  { %246 = vmatprep.mubr.f32.mxu0 %v19_v16  ;;  %v74_v10 = vld [vmem:[%s1095_s0 + $0x1e0] sm:$0xff]  ;;  %v77_v11 = vld [vmem:[%s1095_s0 + $0x1f8] sm:$0xff]  ;;  %v76_v12 = vld [vmem:[%s1095_s0 + $0x1f0] sm:$0xff] }
  0x28   :  { %387 = vmatmul.mubr.f32.vlgmr.msra.gmra.mrb[0].mxu1 %v16_v17 }
  0x29   :  { %247 = vmatmul.mubr.f32.gmra.mrb[2].mxu0 %v18_v18  ;;  %504 = vmatprep.mubr.msk.f32.mxu1 %vm128_vm0, %v21_v19 }
  0x2a   :  { %251 = vmatprep.mubr.f32.mxu0 %v23_v0 }
  0x2c   :  { %392 = vmatmul.mubr.f32.gmra.mrb[2].mxu1 %v20_v20 }
  0x2d   :  { %252 = vmatmul.mubr.f32.gmra.mrb[4].mxu0 %v22_v21  ;;  %505 = vmatprep.mubr.msk.f32.mxu1 %vm128_vm0, %v25_v22 }
  0x2e   :  { %256 = vmatprep.mubr.f32.mxu0 %v27_v23 }
  0x30   :  { %397 = vmatmul.mubr.f32.gmra.mrb[4].mxu1 %v24_v24 }
  0x31   :  { %257 = vmatmul.mubr.f32.gmra.mrb[6].mxu0 %v26_v25  ;;  %506 = vmatprep.mubr.msk.f32.mxu1 %vm128_vm0, %v29_v26 }
  0x32   :  { %261 = vmatprep.mubr.f32.mxu0 %v31_v27 }
  0x34   :  { %402 = vmatmul.mubr.f32.gmra.mrb[6].mxu1 %v28_v28 }
  0x35   :  { %262 = vmatmul.mubr.f32.gmra.mrb[8].mxu0 %v30_v29  ;;  %507 = vmatprep.mubr.msk.f32.mxu1 %vm128_vm0, %v33_v30 }
  0x36   :  { %266 = vmatprep.mubr.f32.mxu0 %v35_v31 }
  0x38   :  { %407 = vmatmul.mubr.f32.gmra.mrb[8].mxu1 %v32_v32 }
  0x39   :  { %267 = vmatmul.mubr.f32.gmra.mrb[10].mxu0 %v34_v33  ;;  %508 = vmatprep.mubr.msk.f32.mxu1 %vm128_vm0, %v37_v34 }
  0x3a   :  { %271 = vmatprep.mubr.f32.mxu0 %v39_v35 }
  0x3c   :  { %412 = vmatmul.mubr.f32.gmra.mrb[10].mxu1 %v36_v36 }
  0x3d   :  { %272 = vmatmul.mubr.f32.gmra.mrb[12].mxu0 %v38_v37  ;;  %509 = vmatprep.mubr.msk.f32.mxu1 %vm128_vm0, %v41_v38 }
  0x3e   :  { %276 = vmatprep.mubr.f32.mxu0 %v43_v39 }
  0x40   :  { %417 = vmatmul.mubr.f32.gmra.mrb[12].mxu1 %v40_v40 }
  0x41   :  { %277 = vmatmul.mubr.f32.gmra.mrb[14].mxu0 %v42_v41  ;;  %510 = vmatprep.mubr.msk.f32.mxu1 %vm128_vm0, %v45_v42 }
  0x42   :  { %281 = vmatprep.mubr.f32.mxu0 %v47_v43 }
  0x44   :  { %422 = vmatmul.mubr.f32.gmra.mrb[14].mxu1 %v44_v44 }
  0x45   :  { %282 = vmatmul.mubr.f32.gmra.mrb[16].mxu0 %v46_v45  ;;  %511 = vmatprep.mubr.msk.f32.mxu1 %vm128_vm0, %v49_v46 }
  0x46   :  { %286 = vmatprep.mubr.f32.mxu0 %v51_v47 }
  0x48   :  { %427 = vmatmul.mubr.f32.gmra.mrb[16].mxu1 %v48_v48 }
  0x49   :  { %287 = vmatmul.mubr.f32.gmra.mrb[18].mxu0 %v50_v49  ;;  %512 = vmatprep.mubr.msk.f32.mxu1 %vm128_vm0, %v53_v50 }
  0x4a   :  { %291 = vmatprep.mubr.f32.mxu0 %v55_v51 }
  0x4c   :  { %432 = vmatmul.mubr.f32.gmra.mrb[18].mxu1 %v52_v52 }
  0x4d   :  { %292 = vmatmul.mubr.f32.gmra.mrb[20].mxu0 %v54_v53  ;;  %513 = vmatprep.mubr.msk.f32.mxu1 %vm128_vm0, %v57_v54 }
  0x4e   :  { %296 = vmatprep.mubr.f32.mxu0 %v59_v55 }
  0x50   :  { %437 = vmatmul.mubr.f32.gmra.mrb[20].mxu1 %v56_v56 }
  0x51   :  { %297 = vmatmul.mubr.f32.gmra.mrb[22].mxu0 %v58_v57  ;;  %514 = vmatprep.mubr.msk.f32.mxu1 %vm128_vm0, %v61_v58 }
  0x52   :  { %301 = vmatprep.mubr.f32.mxu0 %v63_v59 }
  0x54   :  { %442 = vmatmul.mubr.f32.gmra.mrb[22].mxu1 %v60_v60 }
  0x55   :  { %302 = vmatmul.mubr.f32.gmra.mrb[24].mxu0 %v62_v61  ;;  %515 = vmatprep.mubr.msk.f32.mxu1 %vm128_vm0, %v65_v62 }
  0x56   :  { %306 = vmatprep.mubr.f32.mxu0 %v67_v63 }
  0x58   :  { %447 = vmatmul.mubr.f32.gmra.mrb[24].mxu1 %v64_v1 }
  0x59   :  { %307 = vmatmul.mubr.f32.gmra.mrb[26].mxu0 %v66_v2  ;;  %516 = vmatprep.mubr.msk.f32.mxu1 %vm128_vm0, %v69_v3 }
  0x5a   :  { %311 = vmatprep.mubr.f32.mxu0 %v71_v4 }
  0x5c   :  { %452 = vmatmul.mubr.f32.gmra.mrb[26].mxu1 %v68_v5 }
  0x5d   :  { %312 = vmatmul.mubr.f32.gmra.mrb[28].mxu0 %v70_v6  ;;  %517 = vmatprep.mubr.msk.f32.mxu1 %vm128_vm0, %v73_v7 }
  0x5e   :  { %316 = vmatprep.mubr.f32.mxu0 %v75_v8 }
  0x60   :  { %457 = vmatmul.mubr.f32.gmra.mrb[28].mxu1 %v72_v9 }
  0x61   :  { %317 = vmatmul.mubr.f32.gmra.mrb[30].mxu0 %v74_v10  ;;  %518 = vmatprep.mubr.msk.f32.mxu1 %vm128_vm0, %v77_v11 }
  0x64   :  { %462 = vmatmul.mubr.f32.gmra.mrb[30].mxu1 %v76_v12 }
  0xf8   :  { %v552_v13 = vpop.f32.mrb[0].mxu0 }
  0xf9   :  { %v553_v14 = vpop.f32.mrb[1].mxu0 }
  0xfa   :  { %v554_v15 = vadd.f32 %v553_v14, %v552_v13 }
  0xfb   :  { %v388_v16 = vpop.f32.mrb[0].mxu1 }
  0xfc   :  { %v555_v17 = vpop.f32.mrb[2].mxu0  ;;  %v1048_v18 = vadd.f32 %v554_v15, %v388_v16  ;;  %v390_v19 = vpop.f32.mrb[1].mxu1 }
  0xfd   :  { %v556_v0 = vpop.f32.mrb[3].mxu0 }
  0xfe   :  { %v557_v20 = vadd.f32 %v556_v0, %v555_v17 }
  0xff   :  { %v393_v21 = vpop.f32.mrb[2].mxu1 }
 0x100   :  { %v558_v22 = vpop.f32.mrb[4].mxu0  ;;  %v1050_v23 = vadd.f32 %v557_v20, %v393_v21  ;;  %v395_v24 = vpop.f32.mrb[3].mxu1 }
 0x101   :  { %v559_v25 = vpop.f32.mrb[5].mxu0 }
 0x102   :  { %v560_v26 = vadd.f32 %v559_v25, %v558_v22 }
 0x103   :  { %v398_v27 = vpop.f32.mrb[4].mxu1 }
 0x104   :  { %v561_v28 = vpop.f32.mrb[6].mxu0  ;;  %v1052_v29 = vadd.f32 %v560_v26, %v398_v27  ;;  %v400_v30 = vpop.f32.mrb[5].mxu1 }
 0x105   :  { %v562_v31 = vpop.f32.mrb[7].mxu0 }
 0x106   :  { %v563_v32 = vadd.f32 %v562_v31, %v561_v28 }
 0x107   :  { %v403_v33 = vpop.f32.mrb[6].mxu1 }
 0x108   :  { %v564_v34 = vpop.f32.mrb[8].mxu0  ;;  %v1054_v35 = vadd.f32 %v563_v32, %v403_v33  ;;  %v405_v36 = vpop.f32.mrb[7].mxu1 }
 0x109   :  { %v565_v37 = vpop.f32.mrb[9].mxu0  ;;  %v519_v36 = vld [vmem:[%s1096_s2] ss:$0 sm:$0xff] }
 0x10a   :  { %v566_v38 = vadd.f32 %v565_v37, %v564_v34 }
 0x10b   :  { %v408_v39 = vpop.f32.mrb[8].mxu1 }
 0x10c   :  { %v567_v40 = vpop.f32.mrb[10].mxu0  ;;  %v409_v41 = vadd.f32 %v566_v38, %v408_v39  ;;  %v410_v42 = vpop.f32.mrb[9].mxu1 }
 0x10d   :  { %v568_v43 = vpop.f32.mrb[11].mxu0 }
 0x10e   :  { %v569_v44 = vadd.f32 %v568_v43, %v567_v40  ;;  %v467_v45 = vmax.f32 %v1048_v18, %v409_v41 }
 0x10f   :  { %v413_v46 = vpop.f32.mrb[10].mxu1 }
 0x110   :  { %v570_v47 = vpop.f32.mrb[12].mxu0  ;;  %v1057_v48 = vadd.f32 %v569_v44, %v413_v46  ;;  %v415_v49 = vpop.f32.mrb[11].mxu1 }
 0x111   :  { %v571_v50 = vpop.f32.mrb[13].mxu0 }
 0x112   :  { %v572_v51 = vadd.f32 %v571_v50, %v570_v47  ;;  %v468_v52 = vmax.f32 %v1050_v23, %v1057_v48 }
 0x113   :  { %v418_v53 = vpop.f32.mrb[12].mxu1 }
 0x114   :  { %v573_v54 = vpop.f32.mrb[14].mxu0  ;;  %v1061_v55 = vadd.f32 %v572_v51, %v418_v53  ;;  %v420_v56 = vpop.f32.mrb[13].mxu1 }
 0x115   :  { %v574_v57 = vpop.f32.mrb[15].mxu0 }
 0x116   :  { %v575_v58 = vadd.f32 %v574_v57, %v573_v54  ;;  %v469_v59 = vmax.f32 %v1052_v29, %v1061_v55 }
 0x117   :  { %v423_v60 = vpop.f32.mrb[14].mxu1 }
 0x118   :  { %v576_v61 = vpop.f32.mrb[16].mxu0  ;;  %v1065_v62 = vadd.f32 %v575_v58, %v423_v60  ;;  %v425_v63 = vpop.f32.mrb[15].mxu1 }
 0x119   :  { %v577_v1 = vpop.f32.mrb[17].mxu0 }
 0x11a   :  { %v578_v2 = vadd.f32 %v577_v1, %v576_v61  ;;  %v470_v3 = vmax.f32 %v1054_v35, %v1065_v62 }
 0x11b   :  { %v428_v4 = vpop.f32.mrb[16].mxu1 }
 0x11c   :  { %v579_v5 = vpop.f32.mrb[18].mxu0  ;;  %v429_v6 = vadd.f32 %v578_v2, %v428_v4  ;;  %v430_v7 = vpop.f32.mrb[17].mxu1 }
 0x11d   :  { %v580_v8 = vpop.f32.mrb[19].mxu0 }
 0x11e   :  { %v581_v9 = vadd.f32 %v580_v8, %v579_v5 }
 0x11f   :  { %v433_v10 = vpop.f32.mrb[18].mxu1 }
 0x120   :  { %v582_v11 = vpop.f32.mrb[20].mxu0  ;;  %v434_v12 = vadd.f32 %v581_v9, %v433_v10  ;;  %v435_v13 = vpop.f32.mrb[19].mxu1 }
 0x121   :  { %v583_v14 = vpop.f32.mrb[21].mxu0 }
 0x122   :  { %v584_v15 = vadd.f32 %v583_v14, %v582_v11 }
 0x123   :  { %v438_v16 = vpop.f32.mrb[20].mxu1 }
 0x124   :  { %v585_v17 = vpop.f32.mrb[22].mxu0  ;;  %v439_v18 = vadd.f32 %v584_v15, %v438_v16  ;;  %v440_v19 = vpop.f32.mrb[21].mxu1 }
 0x125   :  { %v586_v0 = vpop.f32.mrb[23].mxu0 }
 0x126   :  { %v587_v20 = vadd.f32 %v586_v0, %v585_v17 }
 0x127   :  { %v443_v21 = vpop.f32.mrb[22].mxu1 }
 0x128   :  { %v588_v22 = vpop.f32.mrb[24].mxu0  ;;  %v444_v23 = vadd.f32 %v587_v20, %v443_v21  ;;  %v445_v24 = vpop.f32.mrb[23].mxu1 }
 0x129   :  { %v589_v25 = vpop.f32.mrb[25].mxu0 }
 0x12a   :  { %v590_v26 = vadd.f32 %v589_v25, %v588_v22 }
 0x12b   :  { %v448_v27 = vpop.f32.mrb[24].mxu1 }
 0x12c   :  { %v591_v28 = vpop.f32.mrb[26].mxu0  ;;  %v449_v30 = vadd.f32 %v590_v26, %v448_v27  ;;  %v450_v31 = vpop.f32.mrb[25].mxu1 }
 0x12d   :  { %v592_v32 = vpop.f32.mrb[27].mxu0 }
 0x12e   :  { %v593_v33 = vadd.f32 %v592_v32, %v591_v28  ;;  %v471_v34 = vmax.f32 %v429_v6, %v449_v30 }
 0x12f   :  { %v453_v37 = vpop.f32.mrb[26].mxu1 }
 0x130   :  { %v594_v38 = vpop.f32.mrb[28].mxu0  ;;  %v475_v39 = vmax.f32 %v467_v45, %v471_v34  ;;  %v454_v40 = vadd.f32 %v593_v33, %v453_v37  ;;  %v455_v41 = vpop.f32.mrb[27].mxu1 }
 0x131   :  { %v595_v42 = vpop.f32.mrb[29].mxu0 }
 0x132   :  { %v596_v43 = vadd.f32 %v595_v42, %v594_v38  ;;  %v486_v44 = vadd.f32 %v519_v36, %v475_v39  ;;  %v472_v46 = vmax.f32 %v434_v12, %v454_v40 }
 0x133   :  { %v458_v47 = vpop.f32.mrb[28].mxu1 }
 0x134   :  { %v597_v48 = vpop.f32.mrb[30].mxu0  ;;  %v490_v49 = vmax.f32 %v486_v44, 0.0  ;;  %v476_v50 = vmax.f32 %v468_v52, %v472_v46  ;;  %v459_v51 = vadd.f32 %v596_v43, %v458_v47  ;;  %v460_v53 = vpop.f32.mrb[29].mxu1 }
 0x135   :  { %v598_v54 = vpop.f32.mrb[31].mxu0 }
 0x136   :  { %v599_v56 = vadd.f32 %v598_v54, %v597_v48  ;;  %495 = vst.msk [vmem:[%s1097_s3] sm:$0xff] %vm494_vm1, %v490_v49  ;;  %v487_v45 = vadd.f32 %v519_v36, %v476_v50  ;;  %v473_v57 = vmax.f32 %v439_v18, %v459_v51 }
 0x137   :  { %v463_v58 = vpop.f32.mrb[30].mxu1 }
 0x138   :  { %v491_v60 = vmax.f32 %v487_v45, 0.0  ;;  %v477_v61 = vmax.f32 %v469_v59, %v473_v57  ;;  %v464_v63 = vadd.f32 %v599_v56, %v463_v58  ;;  %v465_v1 = vpop.f32.mrb[31].mxu1 }
 0x13a   :  { %496 = vst.msk [vmem:[%s1097_s3 + $0x8] sm:$0xff] %vm494_vm1, %v491_v60  ;;  %v488_v52 = vadd.f32 %v519_v36, %v477_v61  ;;  %v474_v2 = vmax.f32 %v444_v23, %v464_v63 }
 0x13c   :  { %v492_v4 = vmax.f32 %v488_v52, 0.0  ;;  %v478_v5 = vmax.f32 %v470_v3, %v474_v2 }
 0x13e   :  { %497 = vst.msk [vmem:[%s1097_s3 + $0x10] sm:$0xff] %vm494_vm1, %v492_v4  ;;  %v489_v29 = vadd.f32 %v519_v36, %v478_v5 }
 0x140   :  { %v493_v55 = vmax.f32 %v489_v29, 0.0 }
 0x142   :  { %498 = vst.msk [vmem:[%s1097_s3 + $0x18] sm:$0xff] %vm494_vm1, %v493_v55 }

// kernel: cnn_forward.5
= control target key start
LH: loop header
LB: loop body
LE: loop exit
PB: predicated region body
PF: predicated region fallthrough
CT: control target
= control target key end

     0   :  { %vm149_vm0 = vcmask 523264   ;;  %vm433_vm1 = vcmask 211968   ;;  %s1102_s1 = inlined_call_operand.vmem [shape: f32[960,26], index: 1, kind: input, shape index: {}]   ;;  %s1103_s0 = inlined_call_operand.vmem [shape: f32[8,960], index: 0, kind: input, shape index: {}]   ;;  %s1104_s2 = inlined_call_operand.vmem [shape: f32[1,26], index: 2, kind: input, shape index: {}]   ;;  %s1105_s3 = inlined_call_operand.vmem [shape: f32[8,26], index: 3, kind: output, shape index: {}]  }
   0x1   :  { %v38_v0 = vld [vmem:[%s1102_s1 + $0x80] sm:$0xff]  ;;  %v39_v1 = vld [vmem:[%s1102_s1 + $0x88] sm:$0xff]  ;;  %v40_v11 = vld [vmem:[%s1102_s1 + $0x90] sm:$0xff] }
   0x2   :  { %v70_v2 = vld [vmem:[%s1102_s1 + $0x180] sm:$0xff]  ;;  %v546_v3 = vpack.c.bf16 %v39_v1, %v38_v0  ;;  %v71_v4 = vld [vmem:[%s1102_s1 + $0x188] sm:$0xff]  ;;  %v41_v13 = vld [vmem:[%s1102_s1 + $0x98] sm:$0xff] }
   0x3   :  { %v22_v5 = vld [vmem:[%s1102_s1] sm:$0xff]  ;;  %v23_v6 = vld [vmem:[%s1102_s1 + $0x8] sm:$0xff]  ;;  %v578_v7 = vpack.c.bf16 %v71_v4, %v70_v2  ;;  %v72_v14 = vld [vmem:[%s1102_s1 + $0x190] sm:$0xff]  ;;  %v550_v16 = vpack.c.bf16 %v41_v13, %v40_v11 }
   0x4   :  { %v548_v8 = vpack.c.bf16 %v23_v6, %v22_v5  ;;  %v54_v9 = vld [vmem:[%s1102_s1 + $0x100] sm:$0xff]  ;;  %v55_v10 = vld [vmem:[%s1102_s1 + $0x108] sm:$0xff]  ;;  %547 = vmatprep.subr.bf16.mxu0 %v546_v3  ;;  %v73_v15 = vld [vmem:[%s1102_s1 + $0x198] sm:$0xff] }
   0x5   :  { %v580_v12 = vpack.c.bf16 %v55_v10, %v54_v9  ;;  %579 = vmatprep.subr.bf16.mxu1 %v578_v7  ;;  %v582_v17 = vpack.c.bf16 %v73_v15, %v72_v14  ;;  %v24_v18 = vld [vmem:[%s1102_s1 + $0x10] sm:$0xff]  ;;  %v25_v19 = vld [vmem:[%s1102_s1 + $0x18] sm:$0xff]  ;;  %v42_v23 = vld [vmem:[%s1102_s1 + $0xa0] sm:$0xff] }
   0x6   :  { %549 = vmatpush3.bf16.msra.mxu0 %v548_v8  ;;  %v56_v20 = vld [vmem:[%s1102_s1 + $0x110] sm:$0xff]  ;;  %v552_v21 = vpack.c.bf16 %v25_v19, %v24_v18  ;;  %v57_v22 = vld [vmem:[%s1102_s1 + $0x118] sm:$0xff]  ;;  %v43_v24 = vld [vmem:[%s1102_s1 + $0xa8] sm:$0xff] }
   0x7   :  { %581 = vmatpush3.bf16.msra.mxu1 %v580_v12  ;;  %551 = vmatprep.subr.bf16.mxu0 %v550_v16  ;;  %v584_v25 = vpack.c.bf16 %v57_v22, %v56_v20  ;;  %v554_v26 = vpack.c.bf16 %v43_v24, %v42_v23  ;;  %v74_v27 = vld [vmem:[%s1102_s1 + $0x1a0] sm:$0xff]  ;;  %v75_v28 = vld [vmem:[%s1102_s1 + $0x1a8] sm:$0xff]  ;;  %v44_v35 = vld [vmem:[%s1102_s1 + $0xb0] sm:$0xff] }
   0x8   :  { %583 = vmatprep.subr.bf16.mxu1 %v582_v17  ;;  %v26_v29 = vld [vmem:[%s1102_s1 + $0x20] sm:$0xff]  ;;  %v586_v30 = vpack.c.bf16 %v75_v28, %v74_v27  ;;  %v27_v31 = vld [vmem:[%s1102_s1 + $0x28] sm:$0xff]  ;;  %v45_v36 = vld [vmem:[%s1102_s1 + $0xb8] sm:$0xff] }
   0x9   :  { %v58_v32 = vld [vmem:[%s1102_s1 + $0x120] sm:$0xff]  ;;  %v59_v33 = vld [vmem:[%s1102_s1 + $0x128] sm:$0xff]  ;;  %v556_v34 = vpack.c.bf16 %v27_v31, %v26_v29  ;;  %v76_v37 = vld [vmem:[%s1102_s1 + $0x1b0] sm:$0xff]  ;;  %v558_v39 = vpack.c.bf16 %v45_v36, %v44_v35 }
   0xa   :  { %553 = vmatpush3.bf16.msra.mxu0 %v552_v21  ;;  %v588_v38 = vpack.c.bf16 %v59_v33, %v58_v32  ;;  %v77_v40 = vld [vmem:[%s1102_s1 + $0x1b8] sm:$0xff]  ;;  %v28_v41 = vld [vmem:[%s1102_s1 + $0x30] sm:$0xff]  ;;  %v46_v46 = vld [vmem:[%s1102_s1 + $0xc0] sm:$0xff] }
   0xb   :  { %585 = vmatpush3.bf16.msra.mxu1 %v584_v25  ;;  %555 = vmatprep.subr.bf16.mxu0 %v554_v26  ;;  %v29_v42 = vld [vmem:[%s1102_s1 + $0x38] sm:$0xff]  ;;  %v590_v43 = vpack.c.bf16 %v77_v40, %v76_v37  ;;  %v60_v44 = vld [vmem:[%s1102_s1 + $0x130] sm:$0xff]  ;;  %v47_v47 = vld [vmem:[%s1102_s1 + $0xc8] sm:$0xff] }
   0xc   :  { %587 = vmatprep.subr.bf16.mxu1 %v586_v30  ;;  %v61_v45 = vld [vmem:[%s1102_s1 + $0x138] sm:$0xff]  ;;  %v78_v48 = vld [vmem:[%s1102_s1 + $0x1c0] sm:$0xff]  ;;  %v79_v49 = vld [vmem:[%s1102_s1 + $0x1c8] sm:$0xff]  ;;  %v560_v50 = vpack.c.bf16 %v29_v42, %v28_v41  ;;  %v562_v52 = vpack.c.bf16 %v47_v47, %v46_v46 }
   0xd   :  { %v592_v51 = vpack.c.bf16 %v61_v45, %v60_v44  ;;  %v30_v53 = vld [vmem:[%s1102_s1 + $0x40] sm:$0xff]  ;;  %v31_v54 = vld [vmem:[%s1102_s1 + $0x48] sm:$0xff]  ;;  %v594_v56 = vpack.c.bf16 %v79_v49, %v78_v48  ;;  %v48_v58 = vld [vmem:[%s1102_s1 + $0xd0] sm:$0xff] }
   0xe   :  { %557 = vmatpush3.bf16.msra.mxu0 %v556_v34  ;;  %v62_v55 = vld [vmem:[%s1102_s1 + $0x140] sm:$0xff]  ;;  %v63_v57 = vld [vmem:[%s1102_s1 + $0x148] sm:$0xff]  ;;  %v49_v59 = vld [vmem:[%s1102_s1 + $0xd8] sm:$0xff]  ;;  %v564_v62 = vpack.c.bf16 %v31_v54, %v30_v53 }
   0xf   :  { %589 = vmatpush3.bf16.msra.mxu1 %v588_v38  ;;  %559 = vmatprep.subr.bf16.mxu0 %v558_v39  ;;  %v80_v60 = vld [vmem:[%s1102_s1 + $0x1d0] sm:$0xff]  ;;  %v81_v61 = vld [vmem:[%s1102_s1 + $0x1d8] sm:$0xff]  ;;  %v596_v63 = vpack.c.bf16 %v63_v57, %v62_v55  ;;  %v566_v0 = vpack.c.bf16 %v49_v59, %v48_v58  ;;  %v50_v6 = vld [vmem:[%s1102_s1 + $0xe0] sm:$0xff] }
  0x10   :  { %591 = vmatprep.subr.bf16.mxu1 %v590_v43  ;;  %v32_v1 = vld [vmem:[%s1102_s1 + $0x50] sm:$0xff]  ;;  %v33_v2 = vld [vmem:[%s1102_s1 + $0x58] sm:$0xff]  ;;  %v598_v4 = vpack.c.bf16 %v81_v61, %v80_v60  ;;  %v51_v7 = vld [vmem:[%s1102_s1 + $0xe8] sm:$0xff] }
  0x11   :  { %v64_v3 = vld [vmem:[%s1102_s1 + $0x150] sm:$0xff]  ;;  %v65_v5 = vld [vmem:[%s1102_s1 + $0x158] sm:$0xff]  ;;  %v82_v8 = vld [vmem:[%s1102_s1 + $0x1e0] sm:$0xff]  ;;  %v568_v10 = vpack.c.bf16 %v33_v2, %v32_v1  ;;  %v570_v14 = vpack.c.bf16 %v51_v7, %v50_v6 }
  0x12   :  { %561 = vmatpush3.bf16.msra.mxu0 %v560_v50  ;;  %v83_v9 = vld [vmem:[%s1102_s1 + $0x1e8] sm:$0xff]  ;;  %v34_v11 = vld [vmem:[%s1102_s1 + $0x60] sm:$0xff]  ;;  %v600_v13 = vpack.c.bf16 %v65_v5, %v64_v3  ;;  %v17_v17 = vld [vmem:[%s1103_s0 + $0x18] sm:$0xff] }
  0x13   :  { %593 = vmatpush3.bf16.msra.mxu1 %v592_v51  ;;  %563 = vmatprep.subr.bf16.mxu0 %v562_v52  ;;  %v35_v12 = vld [vmem:[%s1102_s1 + $0x68] sm:$0xff]  ;;  %v66_v15 = vld [vmem:[%s1102_s1 + $0x160] sm:$0xff]  ;;  %v602_v18 = vpack.c.bf16 %v83_v9, %v82_v8  ;;  %v52_v20 = vld [vmem:[%s1102_s1 + $0xf0] sm:$0xff]  ;;  %v679_v51 = vmov 0.0|0.0  }
  0x14   :  { %595 = vmatprep.subr.bf16.mxu1 %v594_v56  ;;  %v15_v16 = vld [vmem:[%s1103_s0 + $0x8] sm:$0xff]  ;;  %v53_v21 = vld [vmem:[%s1102_s1 + $0xf8] sm:$0xff]  ;;  %v84_v22 = vld [vmem:[%s1102_s1 + $0x1f0] sm:$0xff]  ;;  %287 = vmatprep.mubr.f32.mxu1 %v17_v17  ;;  %v572_v24 = vpack.c.bf16 %v35_v12, %v34_v11 }
  0x15   :  { %v67_v19 = vld [vmem:[%s1102_s1 + $0x168] sm:$0xff]  ;;  %217 = vmatprep.mubr.f32.mxu0 %v15_v16  ;;  %v85_v23 = vld [vmem:[%s1102_s1 + $0x1f8] sm:$0xff]  ;;  %v574_v26 = vpack.c.bf16 %v53_v21, %v52_v20  ;;  %v36_v27 = vld [vmem:[%s1102_s1 + $0x70] sm:$0xff] }
  0x16   :  { %565 = vmatpush3.bf16.msra.mxu0 %v564_v62  ;;  %v604_v25 = vpack.c.bf16 %v67_v19, %v66_v15  ;;  %v37_v28 = vld [vmem:[%s1102_s1 + $0x78] sm:$0xff]  ;;  %v68_v29 = vld [vmem:[%s1102_s1 + $0x170] sm:$0xff]  ;;  %v606_v30 = vpack.c.bf16 %v85_v23, %v84_v22  ;;  %v102_v32 = vld [vmem:[%s1102_s1 + $0x280] sm:$0xff] }
  0x17   :  { %597 = vmatpush3.bf16.msra.mxu1 %v596_v63  ;;  %567 = vmatprep.subr.bf16.mxu0 %v566_v0  ;;  %v69_v31 = vld [vmem:[%s1102_s1 + $0x178] sm:$0xff]  ;;  %v103_v33 = vld [vmem:[%s1102_s1 + $0x288] sm:$0xff]  ;;  %v576_v34 = vpack.c.bf16 %v37_v28, %v36_v27  ;;  %v86_v37 = vld [vmem:[%s1102_s1 + $0x200] sm:$0xff] }
  0x18   :  { %599 = vmatprep.subr.bf16.mxu1 %v598_v4  ;;  %v608_v35 = vpack.c.bf16 %v69_v31, %v68_v29  ;;  %v610_v36 = vpack.c.bf16 %v103_v33, %v102_v32  ;;  %v87_v38 = vld [vmem:[%s1102_s1 + $0x208] sm:$0xff]  ;;  %v118_v39 = vld [vmem:[%s1102_s1 + $0x300] sm:$0xff]  ;;  %v104_v41 = vld [vmem:[%s1102_s1 + $0x290] sm:$0xff] }
  0x19   :  { %v119_v40 = vld [vmem:[%s1102_s1 + $0x308] sm:$0xff]  ;;  %v105_v42 = vld [vmem:[%s1102_s1 + $0x298] sm:$0xff]  ;;  %v14_v43 = vld [vmem:[%s1103_s0] sm:$0xff]  ;;  %v612_v45 = vpack.c.bf16 %v87_v38, %v86_v37 }
  0x1a   :  { %569 = vmatpush3.bf16.msra.mxu0 %v568_v10  ;;  %v16_v44 = vld [vmem:[%s1103_s0 + $0x10] sm:$0xff]  ;;  %v643_v46 = vpack.c.bf16 %v119_v40, %v118_v39  ;;  %v614_v47 = vpack.c.bf16 %v105_v42, %v104_v41  ;;  %v89_v49 = vld [vmem:[%s1102_s1 + $0x218] sm:$0xff]  ;;  %v106_v53 = vld [vmem:[%s1102_s1 + $0x2a0] sm:$0xff] }
  0x1b   :  { %601 = vmatpush3.bf16.msra.mxu1 %v600_v13  ;;  %571 = vmatprep.subr.bf16.mxu0 %v570_v14  ;;  %v88_v48 = vld [vmem:[%s1102_s1 + $0x210] sm:$0xff]  ;;  %v121_v52 = vld [vmem:[%s1102_s1 + $0x318] sm:$0xff]  ;;  %v107_v54 = vld [vmem:[%s1102_s1 + $0x2a8] sm:$0xff] }
  0x1c   :  { %603 = vmatprep.subr.bf16.mxu1 %v602_v18  ;;  %v120_v50 = vld [vmem:[%s1102_s1 + $0x310] sm:$0xff]  ;;  %v616_v55 = vpack.c.bf16 %v89_v49, %v88_v48  ;;  %v90_v56 = vld [vmem:[%s1102_s1 + $0x220] sm:$0xff]  ;;  %v618_v58 = vpack.c.bf16 %v107_v54, %v106_v53  ;;  %v91_v59 = vld [vmem:[%s1102_s1 + $0x228] sm:$0xff] }
  0x1d   :  { %v646_v57 = vpack.c.bf16 %v121_v52, %v120_v50  ;;  %v122_v60 = vld [vmem:[%s1102_s1 + $0x320] sm:$0xff]  ;;  %v123_v61 = vld [vmem:[%s1102_s1 + $0x328] sm:$0xff]  ;;  %v108_v62 = vld [vmem:[%s1102_s1 + $0x2b0] sm:$0xff]  ;;  %v620_v1 = vpack.c.bf16 %v91_v59, %v90_v56 }
  0x1e   :  { %573 = vmatpush3.bf16.msra.mxu0 %v572_v24  ;;  %v109_v63 = vld [vmem:[%s1102_s1 + $0x2b8] sm:$0xff]  ;;  %v19_v0 = vld [vmem:[%s1103_s0 + $0x28] sm:$0xff]  ;;  %v92_v2 = vld [vmem:[%s1102_s1 + $0x230] sm:$0xff]  ;;  %v649_v3 = vpack.c.bf16 %v123_v61, %v122_v60 }
  0x1f   :  { %605 = vmatpush3.bf16.msra.mxu1 %v604_v25  ;;  %575 = vmatprep.subr.bf16.mxu0 %v574_v26  ;;  %v622_v4 = vpack.c.bf16 %v109_v63, %v108_v62  ;;  %v93_v5 = vld [vmem:[%s1102_s1 + $0x238] sm:$0xff]  ;;  %v124_v6 = vld [vmem:[%s1102_s1 + $0x330] sm:$0xff]  ;;  %v110_v8 = vld [vmem:[%s1102_s1 + $0x2c0] sm:$0xff] }
  0x20   :  { %607 = vmatprep.subr.bf16.mxu1 %v606_v30  ;;  %v125_v7 = vld [vmem:[%s1102_s1 + $0x338] sm:$0xff]  ;;  %v111_v9 = vld [vmem:[%s1102_s1 + $0x2c8] sm:$0xff]  ;;  %v624_v11 = vpack.c.bf16 %v93_v5, %v92_v2  ;;  %v94_v14 = vld [vmem:[%s1102_s1 + $0x240] sm:$0xff] }
  0x21   :  { %v21_v10 = vld [vmem:[%s1103_s0 + $0x38] sm:$0xff]  ;;  %v652_v12 = vpack.c.bf16 %v125_v7, %v124_v6  ;;  %v626_v13 = vpack.c.bf16 %v111_v9, %v110_v8  ;;  %v95_v15 = vld [vmem:[%s1102_s1 + $0x248] sm:$0xff]  ;;  %v126_v16 = vld [vmem:[%s1102_s1 + $0x340] sm:$0xff] }
  0x22   :  { %577 = vmatpush3.bf16.msra.mxu0 %v576_v34  ;;  %v127_v17 = vld [vmem:[%s1102_s1 + $0x348] sm:$0xff]  ;;  %v112_v18 = vld [vmem:[%s1102_s1 + $0x2d0] sm:$0xff]  ;;  %v113_v19 = vld [vmem:[%s1102_s1 + $0x2d8] sm:$0xff]  ;;  %v628_v20 = vpack.c.bf16 %v95_v15, %v94_v14 }
  0x23   :  { %609 = vmatpush3.bf16.msra.mxu1 %v608_v35  ;;  %611 = vmatprep.subr.bf16.mxu0 %v610_v36  ;;  %v655_v21 = vpack.c.bf16 %v127_v17, %v126_v16  ;;  %v630_v22 = vpack.c.bf16 %v113_v19, %v112_v18  ;;  %v96_v23 = vld [vmem:[%s1102_s1 + $0x250] sm:$0xff]  ;;  %v97_v24 = vld [vmem:[%s1102_s1 + $0x258] sm:$0xff]  ;;  %v114_v27 = vld [vmem:[%s1102_s1 + $0x2e0] sm:$0xff] }
  0x24   :  { %642 = vmatprep.subr.bf16.mxu1 %v679_v51  ;;  %v128_v25 = vld [vmem:[%s1102_s1 + $0x350] sm:$0xff]  ;;  %v129_v26 = vld [vmem:[%s1102_s1 + $0x358] sm:$0xff]  ;;  %v115_v28 = vld [vmem:[%s1102_s1 + $0x2e8] sm:$0xff]  ;;  %v632_v29 = vpack.c.bf16 %v97_v24, %v96_v23 }
  0x25   :  { %218 = vmatmul.mubr.f32.vlgmr.msra.gmra.mrb[0].mxu0 %v14_v43  ;;  %v658_v30 = vpack.c.bf16 %v129_v26, %v128_v25  ;;  %v634_v31 = vpack.c.bf16 %v115_v28, %v114_v27  ;;  %v98_v32 = vld [vmem:[%s1102_s1 + $0x260] sm:$0xff]  ;;  %v99_v33 = vld [vmem:[%s1102_s1 + $0x268] sm:$0xff]  ;;  %v116_v36 = vld [vmem:[%s1102_s1 + $0x2f0] sm:$0xff] }
  0x26   :  { %288 = vmatmul.mubr.f32.vlgmr.msra.gmra.mrb[0].mxu1 %v16_v44  ;;  %613 = vmatpush3.bf16.msra.mxu0 %v612_v45  ;;  %v130_v34 = vld [vmem:[%s1102_s1 + $0x360] sm:$0xff]  ;;  %v131_v35 = vld [vmem:[%s1102_s1 + $0x368] sm:$0xff]  ;;  %v117_v37 = vld [vmem:[%s1102_s1 + $0x2f8] sm:$0xff]  ;;  %v636_v38 = vpack.c.bf16 %v99_v33, %v98_v32 }
  0x27   :  { %644 = vmatpush1.bf16.msra.mxu1 %v643_v46  ;;  %615 = vmatprep.subr.bf16.mxu0 %v614_v47  ;;  %v661_v39 = vpack.c.bf16 %v131_v35, %v130_v34  ;;  %v638_v40 = vpack.c.bf16 %v117_v37, %v116_v36  ;;  %v100_v41 = vld [vmem:[%s1102_s1 + $0x270] sm:$0xff]  ;;  %v101_v42 = vld [vmem:[%s1102_s1 + $0x278] sm:$0xff]  ;;  %v134_v47 = vld [vmem:[%s1102_s1 + $0x380] sm:$0xff] }
  0x28   :  { %645 = vmatprep.subr.bf16.mxu1 %v679_v51  ;;  %357 = vmatprep.mubr.f32.mxu0 %v19_v0  ;;  %v132_v43 = vld [vmem:[%s1102_s1 + $0x370] sm:$0xff]  ;;  %v133_v44 = vld [vmem:[%s1102_s1 + $0x378] sm:$0xff]  ;;  %v640_v45 = vpack.c.bf16 %v101_v42, %v100_v41  ;;  %v135_v48 = vld [vmem:[%s1102_s1 + $0x388] sm:$0xff] }
  0x29   :  { %440 = vmatprep.mubr.msk.f32.mxu1 %vm149_vm0, %v21_v10  ;;  %v664_v46 = vpack.c.bf16 %v133_v44, %v132_v43  ;;  %v18_v49 = vld [vmem:[%s1103_s0 + $0x20] sm:$0xff]  ;;  %v667_v50 = vpack.c.bf16 %v135_v48, %v134_v47  ;;  %v136_v52 = vld [vmem:[%s1102_s1 + $0x390] sm:$0xff]  ;;  %v137_v53 = vld [vmem:[%s1102_s1 + $0x398] sm:$0xff] }
  0x2a   :  { %617 = vmatpush3.bf16.msra.mxu0 %v616_v55  ;;  %v670_v54 = vpack.c.bf16 %v137_v53, %v136_v52  ;;  %v138_v55 = vld [vmem:[%s1102_s1 + $0x3a0] sm:$0xff]  ;;  %v139_v56 = vld [vmem:[%s1102_s1 + $0x3a8] sm:$0xff]  ;;  %v141_v59 = vld [vmem:[%s1102_s1 + $0x3b8] sm:$0xff] }
  0x2b   :  { %647 = vmatpush1.bf16.msra.mxu1 %v646_v57  ;;  %619 = vmatprep.subr.bf16.mxu0 %v618_v58  ;;  %v673_v57 = vpack.c.bf16 %v139_v56, %v138_v55  ;;  %v140_v58 = vld [vmem:[%s1102_s1 + $0x3b0] sm:$0xff]  ;;  %v439_v0 = vld [vmem:[%s1104_s2] ss:$0 sm:$0xff] }
  0x2c   :  { %648 = vmatprep.subr.bf16.mxu1 %v679_v51  ;;  %v676_v60 = vpack.c.bf16 %v141_v59, %v140_v58  ;;  %v20_v61 = vld [vmem:[%s1103_s0 + $0x30] sm:$0xff] }
  0x2e   :  { %621 = vmatpush3.bf16.msra.mxu0 %v620_v1 }
  0x2f   :  { %650 = vmatpush1.bf16.msra.mxu1 %v649_v3  ;;  %623 = vmatprep.subr.bf16.mxu0 %v622_v4 }
  0x30   :  { %651 = vmatprep.subr.bf16.mxu1 %v679_v51 }
  0x32   :  { %625 = vmatpush3.bf16.msra.mxu0 %v624_v11 }
  0x33   :  { %653 = vmatpush1.bf16.msra.mxu1 %v652_v12  ;;  %627 = vmatprep.subr.bf16.mxu0 %v626_v13 }
  0x34   :  { %654 = vmatprep.subr.bf16.mxu1 %v679_v51 }
  0x36   :  { %629 = vmatpush3.bf16.msra.mxu0 %v628_v20 }
  0x37   :  { %656 = vmatpush1.bf16.msra.mxu1 %v655_v21  ;;  %631 = vmatprep.subr.bf16.mxu0 %v630_v22 }
  0x38   :  { %657 = vmatprep.subr.bf16.mxu1 %v679_v51 }
  0x3a   :  { %633 = vmatpush3.bf16.msra.mxu0 %v632_v29 }
  0x3b   :  { %659 = vmatpush1.bf16.msra.mxu1 %v658_v30  ;;  %635 = vmatprep.subr.bf16.mxu0 %v634_v31 }
  0x3c   :  { %660 = vmatprep.subr.bf16.mxu1 %v679_v51 }
  0x3e   :  { %637 = vmatpush3.bf16.msra.mxu0 %v636_v38 }
  0x3f   :  { %662 = vmatpush1.bf16.msra.mxu1 %v661_v39  ;;  %639 = vmatprep.subr.bf16.mxu0 %v638_v40 }
  0x40   :  { %663 = vmatprep.subr.bf16.mxu1 %v679_v51 }
  0x42   :  { %641 = vmatpush3.bf16.msra.mxu0 %v640_v45 }
  0x43   :  { %665 = vmatpush1.bf16.msra.mxu1 %v664_v46 }
  0x44   :  { %666 = vmatprep.subr.bf16.mxu1 %v679_v51 }
  0x45   :  { %358 = vmatmul.mubr.f32.vlgmr.msra.gmra.mrb[2].mxu0 %v18_v49 }
  0x47   :  { %668 = vmatpush1.bf16.msra.mxu1 %v667_v50 }
  0x48   :  { %669 = vmatprep.subr.bf16.mxu1 %v679_v51 }
  0x4b   :  { %671 = vmatpush1.bf16.msra.mxu1 %v670_v54 }
  0x4c   :  { %672 = vmatprep.subr.bf16.mxu1 %v679_v51 }
  0x4f   :  { %674 = vmatpush1.bf16.msra.mxu1 %v673_v57 }
  0x50   :  { %675 = vmatprep.subr.bf16.mxu1 %v679_v51 }
  0x53   :  { %677 = vmatpush1.bf16.msra.mxu1 %v676_v60 }
  0x56   :  { %428 = vmatmul.mubr.f32.vlgmr.msra.gmra.mrb[2].mxu1 %v20_v61 }
  0xf8   :  { %v473_v62 = vpop.f32.mrb[0].mxu0 }
  0xf9   :  { %v508_v63 = vpop.f32.mrb[0].mxu1  ;;  %v474_v1 = vpop.f32.mrb[1].mxu0 }
  0xfa   :  { %v475_v2 = vadd.f32 %v474_v1, %v473_v62  ;;  %v509_v3 = vpop.f32.mrb[1].mxu1 }
  0xfb   :  { %v510_v4 = vadd.f32 %v509_v3, %v508_v63 }
  0xfc   :  { %v220_v5 = vadd.f32 %v475_v2, %v439_v0 }
  0xfe   :  { %v290_v6 = vadd.f32 %v510_v4, %v220_v5 }
 0x118   :  { %v543_v7 = vpop.f32.mrb[2].mxu0 }
 0x119   :  { %v544_v51 = vpop.f32.mrb[3].mxu0 }
 0x11a   :  { %v545_v8 = vadd.f32 %v544_v51, %v543_v7 }
 0x11c   :  { %v360_v9 = vadd.f32 %v545_v8, %v290_v6 }
 0x129   :  { %v429_v10 = vpop.f32.mrb[2].mxu1 }
 0x12a   :  { %v430_v11 = vadd.f32 %v429_v10, %v360_v9  ;;  %v431_v12 = vpop.f32.mrb[3].mxu1 }
 0x12c   :  { %434 = vst.msk [vmem:[%s1105_s3] sm:$0xff] %vm433_vm1, %v430_v11 }

</bundles_post_ra>
